<compile_context>
chip_gen: v5e
topology: v5e:2x2
jax: 0.10.0
libtpu: 0.0.40
codegen_flags: <defaults>
</compile_context>

<pallas_src>
import jax
import jax.numpy as jnp
from jax.experimental import pallas as pl
from jax.experimental.pallas import tpu as pltpu

INPUT_SIZE = 32
HIDDEN_SIZES = [128, 64, 32]
BN_EPS = 1e-5
TILE_B = 512  # rows per grid step (multiple of 16 for bf16 sublane packing)


def grade_nn_kernel(
    x_ref,
    w1_ref, b1_ref,
    w2_ref, b2_ref,
    w3_ref, b3_ref,
    w4_ref, b4_ref,
    out_ref,
):
    """Fused MLP forward for one batch tile; all weights are VMEM-resident."""

    def hidden_block(h_bf16, w_ref, b_ref):
        # bf16 MXU matmul, f32 accumulate, f32 bias + ReLU.
        z = jnp.dot(h_bf16, w_ref[...], preferred_element_type=jnp.float32)
        return jnp.maximum(z + b_ref[...], 0.0)

    h = hidden_block(x_ref[...], w1_ref, b1_ref)                  # (T, 128) f32
    h = hidden_block(h.astype(jnp.bfloat16), w2_ref, b2_ref)      # (T, 64)  f32
    h = hidden_block(h.astype(jnp.bfloat16), w3_ref, b3_ref)      # (T, 32)  f32

    # Final Linear(32, 1): an N=1 MXU matmul would waste a full MXU pass and a
    # result-FIFO drain for one column, so do it on the VPU (elementwise mul)
    # + cross-lane reduce (XLU) instead.  w4_ref is the weight row (1, 32).
    out = jnp.sum(h * w4_ref[...], axis=-1, keepdims=True) + b4_ref[...]
    out_ref[...] = out.astype(out_ref.dtype)


def init_params(key, input_size=INPUT_SIZE, hidden_sizes=HIDDEN_SIZES):
    """Deterministic init mimicking PyTorch defaults, plus non-trivial BN stats."""
    sizes = list(hidden_sizes) + [1]
    k_lin, k_bn = jax.random.split(key)

    params = []
    prev = input_size
    lin_keys = jax.random.split(k_lin, 2 * len(sizes))
    for i, h in enumerate(sizes):
        bound = 1.0 / float(prev) ** 0.5
        w = jax.random.uniform(lin_keys[2 * i], (prev, h), jnp.float32, -bound, bound)
        b = jax.random.uniform(lin_keys[2 * i + 1], (1, h), jnp.float32, -bound, bound)
        params.append((w, b))
        prev = h

    # BatchNorm1d eval-mode affine (use non-default stats so the folding is exercised).
    bn_params = []
    bn_keys = jax.random.split(k_bn, 4 * len(hidden_sizes))
    for i, h in enumerate(hidden_sizes):
        kg, kb, km, kv = bn_keys[4 * i:4 * i + 4]
        gamma = jax.random.uniform(kg, (1, h), jnp.float32, 0.5, 1.5)
        beta = jax.random.uniform(kb, (1, h), jnp.float32, -0.2, 0.2)
        running_mean = 0.1 * jax.random.normal(km, (1, h), jnp.float32)
        running_var = jax.random.uniform(kv, (1, h), jnp.float32, 0.5, 1.5)
        scale = gamma / jnp.sqrt(running_var + BN_EPS)
        shift = beta - running_mean * scale
        bn_params.append((scale, shift))
    return params, bn_params


def fold_bn_into_params(params, bn_params):
    """Fold each eval-mode BN affine (and identity dropout) into the next Linear."""
    (w1, b1), (w2, b2), (w3, b3), (w4, b4) = params
    (s1, t1), (s2, t2), (s3, t3) = bn_params
    w2f = w2 * s1.reshape(-1, 1)
    b2f = b2 + t1 @ w2
    w3f = w3 * s2.reshape(-1, 1)
    b3f = b3 + t2 @ w3
    w4f = w4 * s3.reshape(-1, 1)
    b4f = b4 + t3 @ w4
    # Final weight is passed as a (1, out_prev) row for the VPU reduce path.
    return (w1, b1), (w2f, b2f), (w3f, b3f), (w4f.T, b4f)


def grade_nn_forward(x, params, bn_params, *, tile_b=TILE_B):
    B, F = x.shape
    (w1, b1), (w2, b2), (w3, b3), (w4_row, b4) = fold_bn_into_params(params, bn_params)

    # Cast MXU operands to bf16 once; biases and the final (VPU) weight stay f32.
    w1 = w1.astype(jnp.bfloat16)
    w2 = w2.astype(jnp.bfloat16)
    w3 = w3.astype(jnp.bfloat16)

    num_tiles = pl.cdiv(B, tile_b)
    b_pad = num_tiles * tile_b
    x_bf16 = x.astype(jnp.bfloat16)
    if b_pad != B:
        x_bf16 = jnp.pad(x_bf16, ((0, b_pad - B), (0, 0)))

    weight_inputs = [w1, b1, w2, b2, w3, b3, w4_row, b4]
    # Full-array blocks with constant index_maps: DMA'd once, VMEM-resident
    # across every batch grid step (total ~30 KB of weights).
    weight_specs = [pl.BlockSpec(a.shape, lambda i: (0, 0)) for a in weight_inputs]

    out = pl.pallas_call(
        grade_nn_kernel,
        out_shape=jax.ShapeDtypeStruct((b_pad, 1), jnp.float32),
        grid=(num_tiles,),
        in_specs=[pl.BlockSpec((tile_b, F), lambda i: (i, 0))] + weight_specs,
        out_specs=pl.BlockSpec((tile_b, 1), lambda i: (i, 0)),
        compiler_params=pltpu.CompilerParams(
            dimension_semantics=("parallel",),  # megacore sharding on v7x
        ),
    )(x_bf16, *weight_inputs)
    return out[:B]


def reference_forward_f32(x, params, bn_params):
    """Pure-JAX f32 reference with the original eval-mode semantics."""
    h = x
    for (w, b), (s, t) in zip(params[:-1], bn_params):
        h = jnp.maximum(h @ w + b, 0.0) * s + t
    w4, b4 = params[-1]
    return h @ w4 + b4


def reference_forward_matched(x, folded):
    """Pure-JAX reference with the same numerics as the kernel (bf16 in, f32 accum)."""
    (w1, b1), (w2, b2), (w3, b3), (w4_row, b4) = folded
    h_bf16 = x.astype(jnp.bfloat16)
    h_f32 = None
    for w, b in ((w1, b1), (w2, b2), (w3, b3)):
        z = jnp.dot(h_bf16, w.astype(jnp.bfloat16),
                    preferred_element_type=jnp.float32) + b
        h_f32 = jnp.maximum(z, 0.0)
        h_bf16 = h_f32.astype(jnp.bfloat16)
    return jnp.sum(h_f32 * w4_row, axis=-1, keepdims=True) + b4


if __name__ == "__main__":
    key = jax.random.PRNGKey(0)
    kx, kp = jax.random.split(key)

    B = 1000  # non-multiple of TILE_B: exercises the padded last tile
    x = jax.random.normal(kx, (B, INPUT_SIZE), jnp.float32)
    params, bn_params = init_params(kp)

    out = jax.block_until_ready(grade_nn_forward(x, params, bn_params))
    assert out.shape == (B, 1), out.shape

    # Bit-for-semantics check against a reference using the kernel's numerics.
    folded = fold_bn_into_params(params, bn_params)
    ref_matched = reference_forward_matched(x, folded)
    err_matched = float(jnp.max(jnp.abs(out - ref_matched)))
    assert jnp.allclose(out, ref_matched, atol=1e-2, rtol=1e-2), err_matched

    # Looser check against the exact f32 eval-mode semantics (bf16 MXU inputs).
    ref_f32 = reference_forward_f32(x, params, bn_params)
    err_f32 = float(jnp.max(jnp.abs(out - ref_f32)))
    assert err_f32 < 0.1, err_f32

    print("KERNEL_OK")
</pallas_src>

<mosaic_0001>
module attributes {stable_mosaic.version = 11 : i64} {
  func.func @grade_nn_kernel(%arg0: i32, %arg1: memref<512x32xbf16, #tpu.memory_space<vmem>>, %arg2: memref<32x128xbf16, #tpu.memory_space<vmem>>, %arg3: memref<1x128xf32, #tpu.memory_space<vmem>>, %arg4: memref<128x64xbf16, #tpu.memory_space<vmem>>, %arg5: memref<1x64xf32, #tpu.memory_space<vmem>>, %arg6: memref<64x32xbf16, #tpu.memory_space<vmem>>, %arg7: memref<1x32xf32, #tpu.memory_space<vmem>>, %arg8: memref<1x32xf32, #tpu.memory_space<vmem>>, %arg9: memref<1x1xf32, #tpu.memory_space<vmem>>, %arg10: memref<512x1xf32, #tpu.memory_space<vmem>>) attributes {dimension_semantics = [#tpu.dimension_semantics<parallel>], iteration_bounds = array<i64: 2>, scalar_prefetch = 0 : i64, scratch_operands = 0 : i64, tpu.core_type = #tpu.core_type<tc>, window_params = [{transform_indices = @transform_0, window_bounds = array<i64: 512, 32>}, {pipeline_mode = #tpu.pipeline_mode<synchronous>, transform_indices = @transform_1, window_bounds = array<i64: 32, 128>}, {pipeline_mode = #tpu.pipeline_mode<synchronous>, transform_indices = @transform_2, window_bounds = array<i64: 1, 128>}, {pipeline_mode = #tpu.pipeline_mode<synchronous>, transform_indices = @transform_3, window_bounds = array<i64: 128, 64>}, {pipeline_mode = #tpu.pipeline_mode<synchronous>, transform_indices = @transform_4, window_bounds = array<i64: 1, 64>}, {pipeline_mode = #tpu.pipeline_mode<synchronous>, transform_indices = @transform_5, window_bounds = array<i64: 64, 32>}, {pipeline_mode = #tpu.pipeline_mode<synchronous>, transform_indices = @transform_6, window_bounds = array<i64: 1, 32>}, {pipeline_mode = #tpu.pipeline_mode<synchronous>, transform_indices = @transform_7, window_bounds = array<i64: 1, 32>}, {pipeline_mode = #tpu.pipeline_mode<synchronous>, transform_indices = @transform_8, window_bounds = array<i64: 1, 1>}, {transform_indices = @transform_9, window_bounds = array<i64: 512, 1>}]} {
    %c0 = arith.constant 0 : index
    %c0_0 = arith.constant 0 : index
    %0 = vector.load %arg1[%c0, %c0_0] : memref<512x32xbf16, #tpu.memory_space<vmem>>, vector<512x32xbf16>
    %c0_1 = arith.constant 0 : index
    %c0_2 = arith.constant 0 : index
    %1 = vector.load %arg2[%c0_1, %c0_2] : memref<32x128xbf16, #tpu.memory_space<vmem>>, vector<32x128xbf16>
    %cst = arith.constant dense<0.000000e+00> : vector<512x128xf32>
    %2 = tpu.matmul %0, %1, %cst {dimension_numbers = #tpu.dot_dimension_numbers<[1], [0], [0], [1], [0, 0, 1, 1], [], []>} : vector<512x32xbf16>, vector<32x128xbf16>, vector<512x128xf32> -> vector<512x128xf32>
    %c0_3 = arith.constant 0 : index
    %c0_4 = arith.constant 0 : index
    %3 = vector.load %arg3[%c0_3, %c0_4] : memref<1x128xf32, #tpu.memory_space<vmem>>, vector<1x128xf32>
    %4 = vector.broadcast %3 : vector<1x128xf32> to vector<512x128xf32>
    %5 = arith.addf %2, %4 : vector<512x128xf32>
    %cst_5 = arith.constant 0.000000e+00 : f32
    %6 = vector.broadcast %cst_5 : f32 to vector<512x128xf32>
    %7 = arith.maximumf %5, %6 : vector<512x128xf32>
    %8 = arith.truncf %7 : vector<512x128xf32> to vector<512x128xbf16>
    %c0_6 = arith.constant 0 : index
    %c0_7 = arith.constant 0 : index
    %9 = vector.load %arg4[%c0_6, %c0_7] : memref<128x64xbf16, #tpu.memory_space<vmem>>, vector<128x64xbf16>
    %cst_8 = arith.constant dense<0.000000e+00> : vector<512x64xf32>
    %10 = tpu.matmul %8, %9, %cst_8 {dimension_numbers = #tpu.dot_dimension_numbers<[1], [0], [0], [1], [0, 0, 1, 1], [], []>} : vector<512x128xbf16>, vector<128x64xbf16>, vector<512x64xf32> -> vector<512x64xf32>
    %c0_9 = arith.constant 0 : index
    %c0_10 = arith.constant 0 : index
    %11 = vector.load %arg5[%c0_9, %c0_10] : memref<1x64xf32, #tpu.memory_space<vmem>>, vector<1x64xf32>
    %12 = vector.broadcast %11 : vector<1x64xf32> to vector<512x64xf32>
    %13 = arith.addf %10, %12 : vector<512x64xf32>
    %cst_11 = arith.constant 0.000000e+00 : f32
    %14 = vector.broadcast %cst_11 : f32 to vector<512x64xf32>
    %15 = arith.maximumf %13, %14 : vector<512x64xf32>
    %16 = arith.truncf %15 : vector<512x64xf32> to vector<512x64xbf16>
    %c0_12 = arith.constant 0 : index
    %c0_13 = arith.constant 0 : index
    %17 = vector.load %arg6[%c0_12, %c0_13] : memref<64x32xbf16, #tpu.memory_space<vmem>>, vector<64x32xbf16>
    %cst_14 = arith.constant dense<0.000000e+00> : vector<512x32xf32>
    %18 = tpu.matmul %16, %17, %cst_14 {dimension_numbers = #tpu.dot_dimension_numbers<[1], [0], [0], [1], [0, 0, 1, 1], [], []>} : vector<512x64xbf16>, vector<64x32xbf16>, vector<512x32xf32> -> vector<512x32xf32>
    %c0_15 = arith.constant 0 : index
    %c0_16 = arith.constant 0 : index
    %19 = vector.load %arg7[%c0_15, %c0_16] : memref<1x32xf32, #tpu.memory_space<vmem>>, vector<1x32xf32>
    %20 = vector.broadcast %19 : vector<1x32xf32> to vector<512x32xf32>
    %21 = arith.addf %18, %20 : vector<512x32xf32>
    %cst_17 = arith.constant 0.000000e+00 : f32
    %22 = vector.broadcast %cst_17 : f32 to vector<512x32xf32>
    %23 = arith.maximumf %21, %22 : vector<512x32xf32>
    %c0_18 = arith.constant 0 : index
    %c0_19 = arith.constant 0 : index
    %24 = vector.load %arg8[%c0_18, %c0_19] : memref<1x32xf32, #tpu.memory_space<vmem>>, vector<1x32xf32>
    %25 = vector.broadcast %24 : vector<1x32xf32> to vector<512x32xf32>
    %26 = arith.mulf %23, %25 : vector<512x32xf32>
    %cst_20 = arith.constant dense<0.000000e+00> : vector<512xf32>
    %27 = vector.multi_reduction <add>, %26, %cst_20 [1] : vector<512x32xf32> to vector<512xf32>
    %28 = vector.shape_cast %27 : vector<512xf32> to vector<512x1xf32>
    %c0_21 = arith.constant 0 : index
    %c0_22 = arith.constant 0 : index
    %29 = vector.load %arg9[%c0_21, %c0_22] : memref<1x1xf32, #tpu.memory_space<vmem>>, vector<1x1xf32>
    %30 = vector.broadcast %29 : vector<1x1xf32> to vector<512x1xf32>
    %31 = arith.addf %28, %30 : vector<512x1xf32>
    %c0_23 = arith.constant 0 : index
    %c0_24 = arith.constant 0 : index
    %32 = vector.load %arg10[%c0_23, %c0_24] : memref<512x1xf32, #tpu.memory_space<vmem>>, vector<512x1xf32>
    tpu.vector_store %arg10[%c0_23, %c0_24], %31 {strides = array<i32>} : memref<512x1xf32, #tpu.memory_space<vmem>>, vector<512x1xf32>,
    return
  }
  func.func @transform_0(%arg0: i32) -> (i32, i32) {
    %c0_i32 = arith.constant 0 : i32
    %c0_i32_0 = arith.constant 0 : i32
    return %arg0, %c0_i32 : i32, i32
  }
  func.func @transform_1(%arg0: i32) -> (i32, i32) {
    %c0_i32 = arith.constant 0 : i32
    %c0_i32_0 = arith.constant 0 : i32
    %c0_i32_1 = arith.constant 0 : i32
    return %c0_i32, %c0_i32_0 : i32, i32
  }
  func.func @transform_2(%arg0: i32) -> (i32, i32) {
    %c0_i32 = arith.constant 0 : i32
    %c0_i32_0 = arith.constant 0 : i32
    %c0_i32_1 = arith.constant 0 : i32
    return %c0_i32, %c0_i32_0 : i32, i32
  }
  func.func @transform_3(%arg0: i32) -> (i32, i32) {
    %c0_i32 = arith.constant 0 : i32
    %c0_i32_0 = arith.constant 0 : i32
    %c0_i32_1 = arith.constant 0 : i32
    return %c0_i32, %c0_i32_0 : i32, i32
  }
  func.func @transform_4(%arg0: i32) -> (i32, i32) {
    %c0_i32 = arith.constant 0 : i32
    %c0_i32_0 = arith.constant 0 : i32
    %c0_i32_1 = arith.constant 0 : i32
    return %c0_i32, %c0_i32_0 : i32, i32
  }
  func.func @transform_5(%arg0: i32) -> (i32, i32) {
    %c0_i32 = arith.constant 0 : i32
    %c0_i32_0 = arith.constant 0 : i32
    %c0_i32_1 = arith.constant 0 : i32
    return %c0_i32, %c0_i32_0 : i32, i32
  }
  func.func @transform_6(%arg0: i32) -> (i32, i32) {
    %c0_i32 = arith.constant 0 : i32
    %c0_i32_0 = arith.constant 0 : i32
    %c0_i32_1 = arith.constant 0 : i32
    return %c0_i32, %c0_i32_0 : i32, i32
  }
  func.func @transform_7(%arg0: i32) -> (i32, i32) {
    %c0_i32 = arith.constant 0 : i32
    %c0_i32_0 = arith.constant 0 : i32
    %c0_i32_1 = arith.constant 0 : i32
    return %c0_i32, %c0_i32_0 : i32, i32
  }
  func.func @transform_8(%arg0: i32) -> (i32, i32) {
    %c0_i32 = arith.constant 0 : i32
    %c0_i32_0 = arith.constant 0 : i32
    %c0_i32_1 = arith.constant 0 : i32
    return %c0_i32, %c0_i32_0 : i32, i32
  }
  func.func @transform_9(%arg0: i32) -> (i32, i32) {
    %c0_i32 = arith.constant 0 : i32
    %c0_i32_0 = arith.constant 0 : i32
    return %arg0, %c0_i32 : i32, i32
  }
}

</mosaic_0001>

<bundles_post_ra>
// kernel: tpu_custom_call.1
= control target key start
LH: loop header
LB: loop body
LE: loop exit
PB: predicated region body
PF: predicated region fallthrough
CT: control target
= control target key end

     0   :  { %s2491_s11 = smov 0   ;;  %s3229_s0 = inlined_call_operand.vmem [shape: bf16[1024,32], index: 0, kind: input, shape index: {}]   ;;  %s3230_s1 = inlined_call_operand.vmem [shape: bf16[32,128], index: 1, kind: input, shape index: {}]   ;;  %s3231_s2 = inlined_call_operand.vmem [shape: f32[1,128], index: 2, kind: input, shape index: {}]   ;;  %s3232_s3 = inlined_call_operand.vmem [shape: bf16[128,64], index: 3, kind: input, shape index: {}]   ;;  %s3233_s4 = inlined_call_operand.vmem [shape: f32[1,64], index: 4, kind: input, shape index: {}]   ;;  %s3234_s5 = inlined_call_operand.vmem [shape: bf16[64,32], index: 5, kind: input, shape index: {}]   ;;  %s3235_s6 = inlined_call_operand.vmem [shape: f32[1,32], index: 6, kind: input, shape index: {}]   ;;  %s3236_s7 = inlined_call_operand.vmem [shape: f32[1,32], index: 7, kind: input, shape index: {}]   ;;  %s3237_s8 = inlined_call_operand.<no memory space> [shape: f32[1,1], index: 8, kind: input, shape index: {}]   ;;  %s3238_s9 = inlined_call_operand.vmem [shape: f32[1024,1], index: 9, kind: output, shape index: {}]  }
   0x1   :  { %v14_v0 = vstv %s3237_s8 }
   0x2   :  { %15 = vst [vmem:[#allocation2] sm:$0x1] %v14_v0 }
   0x3 LB: > { %s2093_s12 = sadd.s32 4294967295, %s2436_s11   ;;  %p2097_p0 = scmp.ge.s32.totalorder %s2436_s11, 1  ;;  %s2436_s11 = sphi %s2491_s11, %s21_s11  }
   0x4   : > { %p290_p1 = scmp.lt.s32.totalorder %s2436_s11, 3 }
   0x6   : > { %p291_p2 = pnand %p2097_p0, %p290_p1 }
   0x7   : > { %s2098_s8 = sshll.u32 (!%p291_p2), %s2093_s12, 6 }
   0x8   : > { %294 = sbr.rel (%p291_p2) target bundleno = 1069 (0x42d), region = 56  ;;  %p327_p3 = scmp.lt.s32.totalorder (!%p291_p2), %s2098_s8, 127 }
   0xd   : > { %v2385_v1 = vld [vmem:[%s3230_s1 + $0x8] sm:$0xff]  ;;  %v2384_v2 = vld [vmem:[%s3230_s1] sm:$0xff]  ;;  %s3240_s8 = smov (!%p327_p3, %s2098_s8), 127  ;;  %vm583_vm0 = vcmask 261120   ;;  %v2393_v8 = vld [vmem:[%s3232_s3 + $0x38] sm:$0xff]  ;;  %vm1314_vm1 = vcmask 523264  }
   0xe   : > { %686 = vmatpush.bf16.msra.mxu0 %v2385_v1  ;;  %2398 = vmatpush.bf16.msra.mxu3 %v2385_v1  ;;  %s2099_s17 = sshll.u32 %s3240_s8, 2  ;;  %v2392_v10 = vld [vmem:[%s3232_s3 + $0x30] sm:$0xff]  ;;  %v2391_v11 = vld [vmem:[%s3232_s3 + $0x28] sm:$0xff]  ;;  %v2390_v12 = vld [vmem:[%s3232_s3 + $0x20] sm:$0xff]  ;;  %vm1972_vm2 = vcmask 7168  }
   0xf   : > { %s2511_s20 = scalar_lea.vmem %s3229_s0, %s2099_s17  ;;  %1013 = vmatpush.bf16.msra.mxu1 %v2393_v8  ;;  %v2389_v13 = vld [vmem:[%s3232_s3 + $0x18] sm:$0xff]  ;;  %v2388_v15 = vld [vmem:[%s3232_s3 + $0x10] sm:$0xff]  ;;  %v2387_v16 = vld [vmem:[%s3232_s3 + $0x8] sm:$0xff] }
  0x10   : > { %v2352_v3 = vld [vmem:[%s2511_s20] sm:$0xff]  ;;  %v2353_v4 = vld [vmem:[%s2511_s20 + $0x8] sm:$0xff]  ;;  %v2354_v5 = vld [vmem:[%s2511_s20 + $0x10] sm:$0xff] }
  0x11   : > { %v2355_v6 = vld [vmem:[%s2511_s20 + $0x18] sm:$0xff]  ;;  %v2356_v7 = vld [vmem:[%s2511_s20 + $0x20] sm:$0xff]  ;;  %v2357_v9 = vld [vmem:[%s2511_s20 + $0x28] sm:$0xff] }
  0x12   : > { %687 = vmatpush.bf16.msra.mxu0 %v2384_v2  ;;  %2399 = vmatpush.bf16.msra.mxu3 %v2384_v2  ;;  %v2358_v14 = vld [vmem:[%s2511_s20 + $0x30] sm:$0xff]  ;;  %v2386_v17 = vld [vmem:[%s3232_s3] sm:$0xff]  ;;  %v2359_v18 = vld [vmem:[%s2511_s20 + $0x38] sm:$0xff] }
  0x13   : > { %1014 = vmatpush.bf16.msra.mxu1 %v2392_v10  ;;  %v2360_v19 = vld [vmem:[%s2511_s20 + $0x40] sm:$0xff]  ;;  %v2361_v28 = vld [vmem:[%s2511_s20 + $0x48] sm:$0xff]  ;;  %v2362_v36 = vld [vmem:[%s2511_s20 + $0x50] sm:$0xff] }
  0x14   : > { %v2557_v21 = vld [vmem:[%s3231_s2] ss:$0 sm:$0xff]  ;;  %v2363_v44 = vld [vmem:[%s2511_s20 + $0x58] sm:$0xff]  ;;  %v2365_v60 = vld [vmem:[%s2511_s20 + $0x68] sm:$0xff] }
  0x15   : > { %2238 = vmatmul.msk.bf16.vlgmr.msra.gmra.mxu0 %vm583_vm0, %v2352_v3  ;;  %v2364_v52 = vld [vmem:[%s2511_s20 + $0x60] sm:$0xff] }
  0x16   : > { %2400 = vmatpush.bf16.msrb.mxu3 %v2393_v8 }
  0x17   : > { %1015 = vmatpush.bf16.msra.mxu1 %v2391_v11 }
  0x1a   : > { %2401 = vmatpush.bf16.msrb.mxu3 %v2392_v10 }
  0x1b   : > { %1016 = vmatpush.bf16.msra.mxu1 %v2390_v12 }
  0x1e   : > { %2402 = vmatpush.bf16.msrb.mxu3 %v2391_v11 }
  0x1f   : > { %1017 = vmatpush.bf16.msra.mxu1 %v2389_v13 }
  0x22   : > { %2403 = vmatpush.bf16.msrb.mxu3 %v2390_v12 }
  0x23   : > { %1018 = vmatpush.bf16.msra.mxu1 %v2388_v15 }
  0x25   : > { %2239 = vmatmul.msk.bf16.gmra.mxu0 %vm583_vm0, %v2353_v4  ;;  %v2366_v4 = vld [vmem:[%s2511_s20 + $0x70] sm:$0xff] }
  0x26   : > { %2404 = vmatpush.bf16.msrb.mxu3 %v2389_v13  ;;  %v2595_v13 = vld [vmem:[%s3234_s5 + $0x10] sm:$0xff] }
  0x27   : > { %1019 = vmatpush.bf16.msra.mxu1 %v2387_v16 }
  0x2a   : > { %2405 = vmatpush.bf16.msrb.mxu3 %v2388_v15 }
  0x2b   : > { %1020 = vmatpush.bf16.msra.mxu1 %v2386_v17 }
  0x2e   : > { %2406 = vmatpush.bf16.msrb.mxu3 %v2387_v16  ;;  %v2602_v16 = vld [vmem:[%s3234_s5 + $0x8] sm:$0xff] }
  0x32   : > { %2407 = vmatpush.bf16.msrb.mxu3 %v2386_v17  ;;  %v2609_v17 = vld [vmem:[%s3234_s5] sm:$0xff] }
  0x35   : > { %2240 = vmatmul.msk.bf16.gmra.mxu0 %vm583_vm0, %v2354_v5 }
  0x45   : > { %2241 = vmatmul.msk.bf16.gmra.mxu0 %vm583_vm0, %v2355_v6 }
  0x55   : > { %2242 = vmatmul.msk.bf16.gmra.mxu0 %vm583_vm0, %v2356_v7 }
  0x65   : > { %2243 = vmatmul.msk.bf16.gmra.mxu0 %vm583_vm0, %v2357_v9  ;;  %v2589_v9 = vld [vmem:[%s3234_s5 + $0x18] sm:$0xff] }
  0x66   : > { %1415 = vmatpush.bf16.msra.mxu2 %v2589_v9 }
  0x6a   : > { %1416 = vmatpush.bf16.msra.mxu2 %v2595_v13 }
  0x6e   : > { %1417 = vmatpush.bf16.msra.mxu2 %v2602_v16 }
  0x72   : > { %1418 = vmatpush.bf16.msra.mxu2 %v2609_v17 }
  0x75   : > { %2244 = vmatmul.msk.bf16.gmra.mxu0 %vm583_vm0, %v2358_v14  ;;  %v2367_v14 = vld [vmem:[%s2511_s20 + $0x78] sm:$0xff] }
  0x85   : > { %2245 = vmatmul.msk.bf16.gmra.mxu0 %vm583_vm0, %v2359_v18 }
  0x92   : > { %v689_v20 = vpop.f32.mrf.mxu0 }
  0x93   : > { %v690_v22 = vadd.f32 %v2557_v21, %v689_v20 }
  0x95   : > { %2246 = vmatmul.msk.bf16.gmra.mxu0 %vm583_vm0, %v2360_v19  ;;  %v849_v25 = vmax.f32 %v690_v22, 0.0 }
  0x9a   : > { %v691_v23 = vpop.f32.mrf.mxu0 }
  0x9b   : > { %v692_v24 = vadd.f32 %v2557_v21, %v691_v23 }
  0x9d   : > { %v850_v26 = vmax.f32 %v692_v24, 0.0 }
  0x9f   : > { %v913_v27 = vpack.c.bf16 %v850_v26, %v849_v25  ;;  %v2368_v25 = vld [vmem:[%s2511_s20 + $0x80] sm:$0xff] }
  0xa1   : > { %1021 = vmatmul.bf16.vlgmr.msra.gmra.mxu1 %v913_v27 }
  0xa2   : > { %v694_v29 = vpop.f32.mrf.mxu0 }
  0xa3   : > { %v695_v30 = vadd.f32 %v2557_v21, %v694_v29 }
  0xa5   : > { %2247 = vmatmul.msk.bf16.gmra.mxu0 %vm583_vm0, %v2361_v28  ;;  %v851_v33 = vmax.f32 %v695_v30, 0.0 }
  0xaa   : > { %v696_v31 = vpop.f32.mrf.mxu0 }
  0xab   : > { %v697_v32 = vadd.f32 %v2557_v21, %v696_v31 }
  0xad   : > { %v852_v34 = vmax.f32 %v697_v32, 0.0 }
  0xaf   : > { %v914_v35 = vpack.c.bf16 %v852_v34, %v851_v33  ;;  %v2621_v34 = vld [vmem:[%s3233_s4] ss:$0 sm:$0xff] }
  0xb1   : > { %1026 = vmatmul.bf16.gmra.mxu1 %v914_v35  ;;  %v2369_v35 = vld [vmem:[%s2511_s20 + $0x88] sm:$0xff] }
  0xb2   : > { %v699_v37 = vpop.f32.mrf.mxu0 }
  0xb3   : > { %v700_v38 = vadd.f32 %v2557_v21, %v699_v37 }
  0xb5   : > { %2248 = vmatmul.msk.bf16.gmra.mxu0 %vm583_vm0, %v2362_v36  ;;  %v853_v41 = vmax.f32 %v700_v38, 0.0 }
  0xba   : > { %v701_v39 = vpop.f32.mrf.mxu0 }
  0xbb   : > { %v702_v40 = vadd.f32 %v2557_v21, %v701_v39 }
  0xbd   : > { %v854_v42 = vmax.f32 %v702_v40, 0.0 }
  0xbf   : > { %v915_v43 = vpack.c.bf16 %v854_v42, %v853_v41 }
  0xc1   : > { %1031 = vmatmul.bf16.gmra.mxu1 %v915_v43 }
  0xc2   : > { %v704_v45 = vpop.f32.mrf.mxu0 }
  0xc3   : > { %v705_v46 = vadd.f32 %v2557_v21, %v704_v45 }
  0xc5   : > { %2249 = vmatmul.msk.bf16.gmra.mxu0 %vm583_vm0, %v2363_v44  ;;  %v855_v49 = vmax.f32 %v705_v46, 0.0 }
  0xca   : > { %v706_v47 = vpop.f32.mrf.mxu0 }
  0xcb   : > { %v707_v48 = vadd.f32 %v2557_v21, %v706_v47 }
  0xcd   : > { %v856_v50 = vmax.f32 %v707_v48, 0.0 }
  0xcf   : > { %v916_v51 = vpack.c.bf16 %v856_v50, %v855_v49  ;;  %v2370_v50 = vld [vmem:[%s2511_s20 + $0x90] sm:$0xff] }
  0xd1   : > { %1036 = vmatmul.bf16.gmra.mxu1 %v916_v51 }
  0xd2   : > { %v709_v53 = vpop.f32.mrf.mxu0 }
  0xd3   : > { %v710_v54 = vadd.f32 %v2557_v21, %v709_v53 }
  0xd5   : > { %2250 = vmatmul.msk.bf16.gmra.mxu0 %vm583_vm0, %v2364_v52  ;;  %v857_v57 = vmax.f32 %v710_v54, 0.0 }
  0xda   : > { %v711_v55 = vpop.f32.mrf.mxu0 }
  0xdb   : > { %v712_v56 = vadd.f32 %v2557_v21, %v711_v55 }
  0xdd   : > { %v858_v58 = vmax.f32 %v712_v56, 0.0 }
  0xdf   : > { %v917_v59 = vpack.c.bf16 %v858_v58, %v857_v57 }
  0xe1   : > { %1041 = vmatmul.bf16.gmra.mxu1 %v917_v59 }
  0xe2   : > { %v714_v61 = vpop.f32.mrf.mxu0 }
  0xe3   : > { %v715_v62 = vadd.f32 %v2557_v21, %v714_v61 }
  0xe5   : > { %2251 = vmatmul.msk.bf16.gmra.mxu0 %vm583_vm0, %v2365_v60  ;;  %v859_v1 = vmax.f32 %v715_v62, 0.0 }
  0xea   : > { %v716_v63 = vpop.f32.mrf.mxu0 }
  0xeb   : > { %v717_v0 = vadd.f32 %v2557_v21, %v716_v63 }
  0xed   : > { %v860_v2 = vmax.f32 %v717_v0, 0.0 }
  0xef   : > { %v918_v3 = vpack.c.bf16 %v860_v2, %v859_v1  ;;  %v2371_v1 = vld [vmem:[%s2511_s20 + $0x98] sm:$0xff] }
  0xf1   : > { %1046 = vmatmul.bf16.gmra.mxu1 %v918_v3 }
  0xf2   : > { %v719_v5 = vpop.f32.mrf.mxu0 }
  0xf3   : > { %v720_v6 = vadd.f32 %v2557_v21, %v719_v5 }
  0xf5   : > { %2252 = vmatmul.msk.bf16.gmra.mxu0 %vm583_vm0, %v2366_v4  ;;  %v861_v10 = vmax.f32 %v720_v6, 0.0 }
  0xfa   : > { %v721_v7 = vpop.f32.mrf.mxu0 }
  0xfb   : > { %v722_v8 = vadd.f32 %v2557_v21, %v721_v7 }
  0xfd   : > { %v862_v11 = vmax.f32 %v722_v8, 0.0 }
  0xff   : > { %v919_v12 = vpack.c.bf16 %v862_v11, %v861_v10 }
 0x101   : > { %1051 = vmatmul.bf16.gmra.mxu1 %v919_v12 }
 0x102   : > { %v724_v15 = vpop.f32.mrf.mxu0 }
 0x103   : > { %v725_v18 = vadd.f32 %v2557_v21, %v724_v15 }
 0x105   : > { %2253 = vmatmul.msk.bf16.gmra.mxu0 %vm583_vm0, %v2367_v14  ;;  %v863_v22 = vmax.f32 %v725_v18, 0.0 }
 0x10a   : > { %v726_v19 = vpop.f32.mrf.mxu0 }
 0x10b   : > { %v727_v20 = vadd.f32 %v2557_v21, %v726_v19 }
 0x10d   : > { %v864_v23 = vmax.f32 %v727_v20, 0.0  ;;  %v2372_v20 = vld [vmem:[%s2511_s20 + $0xa0] sm:$0xff] }
 0x10f   : > { %v920_v24 = vpack.c.bf16 %v864_v23, %v863_v22 }
 0x111   : > { %1056 = vmatmul.bf16.gmra.mxu1 %v920_v24 }
 0x112   : > { %v729_v26 = vpop.f32.mrf.mxu0 }
 0x113   : > { %v730_v27 = vadd.f32 %v2557_v21, %v729_v26 }
 0x115   : > { %2254 = vmatmul.msk.bf16.gmra.mxu0 %vm583_vm0, %v2368_v25  ;;  %v865_v30 = vmax.f32 %v730_v27, 0.0 }
 0x11a   : > { %v731_v28 = vpop.f32.mrf.mxu0 }
 0x11b   : > { %v732_v29 = vadd.f32 %v2557_v21, %v731_v28 }
 0x11d   : > { %v866_v31 = vmax.f32 %v732_v29, 0.0 }
 0x11e   : > { %v1022_v32 = vpop.f32.mrf.mxu1 }
 0x11f   : > { %v921_v33 = vpack.c.bf16 %v866_v31, %v865_v30  ;;  %v1023_v37 = vadd.f32 %v2621_v34, %v1022_v32 }
 0x121   : > { %1061 = vmatmul.bf16.gmra.mxu1 %v921_v33  ;;  %v1182_v40 = vmax.f32 %v1023_v37, 0.0  ;;  %v2373_v37 = vld [vmem:[%s2511_s20 + $0xa8] sm:$0xff] }
 0x122   : > { %v734_v36 = vpop.f32.mrf.mxu0 }
 0x123   : > { %v735_v41 = vadd.f32 %v2557_v21, %v734_v36 }
 0x125   : > { %2255 = vmatmul.msk.bf16.gmra.mxu0 %vm583_vm0, %v2369_v35  ;;  %v867_v46 = vmax.f32 %v735_v41, 0.0 }
 0x126   : > { %v1024_v38 = vpop.f32.mrf.mxu1 }
 0x127   : > { %v1025_v39 = vadd.f32 %v2621_v34, %v1024_v38 }
 0x129   : > { %v1183_v42 = vmax.f32 %v1025_v39, 0.0 }
 0x12a   : > { %v736_v43 = vpop.f32.mrf.mxu0 }
 0x12b   : > { %v737_v44 = vadd.f32 %v2557_v21, %v736_v43  ;;  %v1246_v45 = vpack.c.bf16 %v1183_v42, %v1182_v40 }
 0x12d   : > { %v868_v47 = vmax.f32 %v737_v44, 0.0  ;;  %2318 = vmatmul.msk.bf16.vlgmr.msra.gmra.mxu2 %vm1314_vm1, %v1246_v45 }
 0x12e   : > { %v1027_v48 = vpop.f32.mrf.mxu1 }
 0x12f   : > { %v922_v49 = vpack.c.bf16 %v868_v47, %v867_v46  ;;  %v1028_v52 = vadd.f32 %v2621_v34, %v1027_v48 }
 0x131   : > { %1066 = vmatmul.bf16.gmra.mxu1 %v922_v49  ;;  %v1184_v55 = vmax.f32 %v1028_v52, 0.0  ;;  %v2374_v52 = vld [vmem:[%s2511_s20 + $0xb0] sm:$0xff] }
 0x132   : > { %v739_v51 = vpop.f32.mrf.mxu0 }
 0x133   : > { %v740_v56 = vadd.f32 %v2557_v21, %v739_v51 }
 0x135   : > { %2256 = vmatmul.msk.bf16.gmra.mxu0 %vm583_vm0, %v2370_v50  ;;  %v869_v61 = vmax.f32 %v740_v56, 0.0 }
 0x136   : > { %v1029_v53 = vpop.f32.mrf.mxu1 }
 0x137   : > { %v1030_v54 = vadd.f32 %v2621_v34, %v1029_v53 }
 0x139   : > { %v1185_v57 = vmax.f32 %v1030_v54, 0.0 }
 0x13a   : > { %v741_v58 = vpop.f32.mrf.mxu0 }
 0x13b   : > { %v742_v59 = vadd.f32 %v2557_v21, %v741_v58  ;;  %v1247_v60 = vpack.c.bf16 %v1185_v57, %v1184_v55  ;;  %v2377_v55 = vld [vmem:[%s2511_s20 + $0xc8] sm:$0xff] }
 0x13c   : > { %2263 = vmatmul.msk.bf16.vlgmr.msra.gmra.mxu3 %vm583_vm0, %v2377_v55 }
 0x13d   : > { %v870_v62 = vmax.f32 %v742_v59, 0.0  ;;  %2319 = vmatmul.msk.bf16.gmra.mxu2 %vm1314_vm1, %v1247_v60  ;;  %2408 = vmatpush.bf16.msra.mxu3 %v2589_v9  ;;  %v2375_v9 = vld [vmem:[%s2511_s20 + $0xb8] sm:$0xff] }
 0x13e   : > { %v1032_v63 = vpop.f32.mrf.mxu1 }
 0x13f   : > { %v923_v0 = vpack.c.bf16 %v870_v62, %v869_v61  ;;  %v1033_v3 = vadd.f32 %v2621_v34, %v1032_v63 }
 0x141   : > { %1071 = vmatmul.bf16.gmra.mxu1 %v923_v0  ;;  %v1186_v6 = vmax.f32 %v1033_v3, 0.0  ;;  %2409 = vmatpush.bf16.msra.mxu3 %v2595_v13 }
 0x142   : > { %v744_v2 = vpop.f32.mrf.mxu0 }
 0x143   : > { %v745_v7 = vadd.f32 %v2557_v21, %v744_v2 }
 0x145   : > { %2257 = vmatmul.msk.bf16.gmra.mxu0 %vm583_vm0, %v2371_v1  ;;  %v871_v14 = vmax.f32 %v745_v7, 0.0  ;;  %2410 = vmatpush.bf16.msra.mxu3 %v2602_v16 }
 0x146   : > { %v1034_v4 = vpop.f32.mrf.mxu1 }
 0x147   : > { %v1035_v5 = vadd.f32 %v2621_v34, %v1034_v4 }
 0x149   : > { %v1187_v8 = vmax.f32 %v1035_v5, 0.0  ;;  %2411 = vmatpush.bf16.msra.mxu3 %v2609_v17 }
 0x14a   : > { %v746_v10 = vpop.f32.mrf.mxu0 }
 0x14b   : > { %v747_v11 = vadd.f32 %v2557_v21, %v746_v10  ;;  %v1248_v12 = vpack.c.bf16 %v1187_v8, %v1186_v6  ;;  %v2378_v6 = vld [vmem:[%s2511_s20 + $0xd0] sm:$0xff] }
 0x14c   : > { %2264 = vmatmul.msk.bf16.gmra.mxu3 %vm583_vm0, %v2378_v6 }
 0x14d   : > { %v872_v15 = vmax.f32 %v747_v11, 0.0  ;;  %2320 = vmatmul.msk.bf16.gmra.mxu2 %vm1314_vm1, %v1248_v12 }
 0x14e   : > { %v1037_v18 = vpop.f32.mrf.mxu1 }
 0x14f   : > { %v924_v19 = vpack.c.bf16 %v872_v15, %v871_v14  ;;  %v1038_v23 = vadd.f32 %v2621_v34, %v1037_v18 }
 0x151   : > { %1076 = vmatmul.bf16.gmra.mxu1 %v924_v19  ;;  %v1188_v26 = vmax.f32 %v1038_v23, 0.0 }
 0x152   : > { %v749_v22 = vpop.f32.mrf.mxu0 }
 0x153   : > { %v750_v27 = vadd.f32 %v2557_v21, %v749_v22 }
 0x155   : > { %2258 = vmatmul.msk.bf16.gmra.mxu0 %vm583_vm0, %v2372_v20  ;;  %v873_v32 = vmax.f32 %v750_v27, 0.0  ;;  %v2376_v20 = vld [vmem:[%s2511_s20 + $0xc0] sm:$0xff] }
 0x156   : > { %v1039_v24 = vpop.f32.mrf.mxu1 }
 0x157   : > { %v1040_v25 = vadd.f32 %v2621_v34, %v1039_v24  ;;  %v2379_v24 = vld [vmem:[%s2511_s20 + $0xd8] sm:$0xff] }
 0x159   : > { %v1189_v28 = vmax.f32 %v1040_v25, 0.0 }
 0x15a   : > { %v751_v29 = vpop.f32.mrf.mxu0 }
 0x15b   : > { %v752_v30 = vadd.f32 %v2557_v21, %v751_v29  ;;  %v1249_v31 = vpack.c.bf16 %v1189_v28, %v1188_v26 }
 0x15c   : > { %2265 = vmatmul.msk.bf16.gmra.mxu3 %vm583_vm0, %v2379_v24 }
 0x15d   : > { %v874_v33 = vmax.f32 %v752_v30, 0.0  ;;  %2321 = vmatmul.msk.bf16.gmra.mxu2 %vm1314_vm1, %v1249_v31 }
 0x15e   : > { %v1042_v35 = vpop.f32.mrf.mxu1 }
 0x15f   : > { %v925_v36 = vpack.c.bf16 %v874_v33, %v873_v32  ;;  %v1043_v39 = vadd.f32 %v2621_v34, %v1042_v35 }
 0x161   : > { %1081 = vmatmul.bf16.gmra.mxu1 %v925_v36  ;;  %v1190_v42 = vmax.f32 %v1043_v39, 0.0 }
 0x162   : > { %v754_v38 = vpop.f32.mrf.mxu0 }
 0x163   : > { %v755_v43 = vadd.f32 %v2557_v21, %v754_v38 }
 0x165   : > { %2259 = vmatmul.msk.bf16.gmra.mxu0 %vm583_vm0, %v2373_v37  ;;  %v875_v48 = vmax.f32 %v755_v43, 0.0 }
 0x166   : > { %v1044_v40 = vpop.f32.mrf.mxu1 }
 0x167   : > { %v1045_v41 = vadd.f32 %v2621_v34, %v1044_v40  ;;  %v2380_v40 = vld [vmem:[%s2511_s20 + $0xe0] sm:$0xff] }
 0x169   : > { %v1191_v44 = vmax.f32 %v1045_v41, 0.0 }
 0x16a   : > { %v756_v45 = vpop.f32.mrf.mxu0 }
 0x16b   : > { %v757_v46 = vadd.f32 %v2557_v21, %v756_v45  ;;  %v1250_v47 = vpack.c.bf16 %v1191_v44, %v1190_v42 }
 0x16c   : > { %2266 = vmatmul.msk.bf16.gmra.mxu3 %vm583_vm0, %v2380_v40 }
 0x16d   : > { %v876_v49 = vmax.f32 %v757_v46, 0.0  ;;  %2322 = vmatmul.msk.bf16.gmra.mxu2 %vm1314_vm1, %v1250_v47 }
 0x16e   : > { %v1047_v50 = vpop.f32.mrf.mxu1 }
 0x16f   : > { %v926_v51 = vpack.c.bf16 %v876_v49, %v875_v48  ;;  %v1048_v54 = vadd.f32 %v2621_v34, %v1047_v50 }
 0x171   : > { %1086 = vmatmul.bf16.gmra.mxu1 %v926_v51  ;;  %v1192_v58 = vmax.f32 %v1048_v54, 0.0  ;;  %v2699_v51 = vld [vmem:[%s3235_s6] ss:$0 sm:$0xff] }
 0x172   : > { %v759_v53 = vpop.f32.mrf.mxu0 }
 0x173   : > { %v760_v59 = vadd.f32 %v2557_v21, %v759_v53 }
 0x175   : > { %2260 = vmatmul.msk.bf16.gmra.mxu0 %vm583_vm0, %v2374_v52  ;;  %v877_v0 = vmax.f32 %v760_v59, 0.0 }
 0x176   : > { %v1049_v56 = vpop.f32.mrf.mxu1 }
 0x177   : > { %v1050_v57 = vadd.f32 %v2621_v34, %v1049_v56  ;;  %v2705_v56 = vld [vmem:[%s3236_s7] ss:$0 sm:$0xff] }
 0x179   : > { %v1193_v60 = vmax.f32 %v1050_v57, 0.0 }
 0x17a   : > { %v761_v61 = vpop.f32.mrf.mxu0 }
 0x17b   : > { %v762_v62 = vadd.f32 %v2557_v21, %v761_v61  ;;  %v1251_v63 = vpack.c.bf16 %v1193_v60, %v1192_v58  ;;  %v2381_v61 = vld [vmem:[%s2511_s20 + $0xe8] sm:$0xff] }
 0x17c   : > { %2267 = vmatmul.msk.bf16.gmra.mxu3 %vm583_vm0, %v2381_v61 }
 0x17d   : > { %v878_v1 = vmax.f32 %v762_v62, 0.0  ;;  %2323 = vmatmul.msk.bf16.gmra.mxu2 %vm1314_vm1, %v1251_v63 }
 0x17e   : > { %v1052_v2 = vpop.f32.mrf.mxu1 }
 0x17f   : > { %v927_v3 = vpack.c.bf16 %v878_v1, %v877_v0  ;;  %v1053_v5 = vadd.f32 %v2621_v34, %v1052_v2 }
 0x181   : > { %1091 = vmatmul.bf16.gmra.mxu1 %v927_v3  ;;  %v1194_v8 = vmax.f32 %v1053_v5, 0.0 }
 0x182   : > { %v764_v4 = vpop.f32.mrf.mxu0 }
 0x183   : > { %v765_v16 = vadd.f32 %v2557_v21, %v764_v4 }
 0x185   : > { %2261 = vmatmul.msk.bf16.gmra.mxu0 %vm583_vm0, %v2375_v9  ;;  %v879_v14 = vmax.f32 %v765_v16, 0.0 }
 0x186   : > { %v1054_v13 = vpop.f32.mrf.mxu1 }
 0x187   : > { %v1055_v7 = vadd.f32 %v2621_v34, %v1054_v13 }
 0x189   : > { %v1195_v10 = vmax.f32 %v1055_v7, 0.0 }
 0x18a   : > { %v766_v11 = vpop.f32.mrf.mxu0 }
 0x18b   : > { %v767_v12 = vadd.f32 %v2557_v21, %v766_v11  ;;  %v1252_v17 = vpack.c.bf16 %v1195_v10, %v1194_v8 }
 0x18d   : > { %v880_v15 = vmax.f32 %v767_v12, 0.0  ;;  %2324 = vmatmul.msk.bf16.gmra.mxu2 %vm1314_vm1, %v1252_v17 }
 0x18e   : > { %v1057_v18 = vpop.f32.mrf.mxu1 }
 0x18f   : > { %v928_v19 = vpack.c.bf16 %v880_v15, %v879_v14  ;;  %v1058_v23 = vadd.f32 %v2621_v34, %v1057_v18 }
 0x191   : > { %1096 = vmatmul.bf16.gmra.mxu1 %v928_v19  ;;  %v1196_v27 = vmax.f32 %v1058_v23, 0.0  ;;  %v2382_v23 = vld [vmem:[%s2511_s20 + $0xf0] sm:$0xff] }
 0x192   : > { %v769_v22 = vpop.f32.mrf.mxu0  ;;  %2268 = vmatmul.msk.bf16.gmra.mxu3 %vm583_vm0, %v2382_v23 }
 0x193   : > { %v770_v28 = vadd.f32 %v2557_v21, %v769_v22 }
 0x195   : > { %2262 = vmatmul.msk.bf16.gmra.mxu0 %vm583_vm0, %v2376_v20  ;;  %v881_v33 = vmax.f32 %v770_v28, 0.0 }
 0x196   : > { %v1059_v25 = vpop.f32.mrf.mxu1 }
 0x197   : > { %v1060_v26 = vadd.f32 %v2621_v34, %v1059_v25 }
 0x199   : > { %v1197_v29 = vmax.f32 %v1060_v26, 0.0 }
 0x19a   : > { %v771_v30 = vpop.f32.mrf.mxu0 }
 0x19b   : > { %v772_v31 = vadd.f32 %v2557_v21, %v771_v30  ;;  %v1253_v32 = vpack.c.bf16 %v1197_v29, %v1196_v27 }
 0x19d   : > { %v882_v35 = vmax.f32 %v772_v31, 0.0  ;;  %2325 = vmatmul.msk.bf16.gmra.mxu2 %vm1314_vm1, %v1253_v32 }
 0x19e   : > { %v1062_v36 = vpop.f32.mrf.mxu1 }
 0x19f   : > { %v929_v37 = vpack.c.bf16 %v882_v35, %v881_v33  ;;  %v1063_v39 = vadd.f32 %v2621_v34, %v1062_v36 }
 0x1a1   : > { %1101 = vmatmul.bf16.gmra.mxu1 %v929_v37  ;;  %v1198_v43 = vmax.f32 %v1063_v39, 0.0 }
 0x1a2   : > { %v774_v38 = vpop.f32.mrf.mxu0 }
 0x1a3   : > { %v775_v44 = vadd.f32 %v2557_v21, %v774_v38 }
 0x1a5   : > { %v883_v49 = vmax.f32 %v775_v44, 0.0 }
 0x1a6   : > { %v1064_v41 = vpop.f32.mrf.mxu1 }
 0x1a7   : > { %v1065_v42 = vadd.f32 %v2621_v34, %v1064_v41 }
 0x1a9   : > { %v1199_v45 = vmax.f32 %v1065_v42, 0.0 }
 0x1aa   : > { %v776_v46 = vpop.f32.mrf.mxu0 }
 0x1ab   : > { %v777_v47 = vadd.f32 %v2557_v21, %v776_v46  ;;  %v1254_v48 = vpack.c.bf16 %v1199_v45, %v1198_v43 }
 0x1ad   : > { %v884_v50 = vmax.f32 %v777_v47, 0.0  ;;  %2326 = vmatmul.msk.bf16.gmra.mxu2 %vm1314_vm1, %v1254_v48 }
 0x1ae   : > { %v1067_v52 = vpop.f32.mrf.mxu1 }
 0x1af   : > { %v930_v53 = vpack.c.bf16 %v884_v50, %v883_v49  ;;  %v1068_v59 = vadd.f32 %v2621_v34, %v1067_v52  ;;  %v2383_v49 = vld [vmem:[%s2511_s20 + $0xf8] sm:$0xff]  ;;  %s2101_s20 = sshll.u32 %s3240_s8, 3 }
 0x1b0   : > { %v1420_v54 = vpop.f32.mrf.mxu2  ;;  %2269 = vmatmul.msk.bf16.gmra.mxu3 %vm583_vm0, %v2383_v49  ;;  %s2805_s16 = scalar_lea.vmem %s3238_s9, %s2101_s20 }
 0x1b1   : > { %v1421_v55 = vadd.f32 %v2699_v51, %v1420_v54  ;;  %1106 = vmatmul.bf16.gmra.mxu1 %v930_v53  ;;  %v1200_v2 = vmax.f32 %v1068_v59, 0.0 }
 0x1b2   : > { %v779_v57 = vpop.f32.mrf.mxu0 }
 0x1b3   : > { %v1580_v58 = vmax.f32 %v1421_v55, 0.0  ;;  %v780_v3 = vadd.f32 %v2557_v21, %v779_v57 }
 0x1b5   : > { %v1648_v60 = vmul.f32 %v2705_v56, %v1580_v58  ;;  %v885_v8 = vmax.f32 %v780_v3, 0.0 }
 0x1b6   : > { %v1069_v62 = vpop.f32.mrf.mxu1 }
 0x1b7   : > { %v1070_v63 = vadd.f32 %v2621_v34, %v1069_v62  ;;  %v1712_v0 = vsel %vm583_vm0, %v1648_v60, 0.0 }
 0x1b8   : > { %v1422_v1 = vpop.f32.mrf.mxu2  ;;  %1713 = vadd.xlane.f32.xlu0 %v1712_v0 }
 0x1b9   : > { %v1201_v9 = vmax.f32 %v1070_v63, 0.0  ;;  %v1423_v4 = vadd.f32 %v2699_v51, %v1422_v1 }
 0x1ba   : > { %v781_v5 = vpop.f32.mrf.mxu0 }
 0x1bb   : > { %v1581_v6 = vmax.f32 %v1423_v4, 0.0  ;;  %v782_v13 = vadd.f32 %v2557_v21, %v781_v5  ;;  %v1255_v7 = vpack.c.bf16 %v1201_v9, %v1200_v2 }
 0x1bd   : > { %v886_v16 = vmax.f32 %v782_v13, 0.0  ;;  %2327 = vmatmul.msk.bf16.gmra.mxu2 %vm1314_vm1, %v1255_v7  ;;  %v1649_v10 = vmul.f32 %v2705_v56, %v1581_v6 }
 0x1be   : > { %v1072_v11 = vpop.f32.mrf.mxu1 }
 0x1bf   : > { %v931_v12 = vpack.c.bf16 %v886_v16, %v885_v8  ;;  %v1715_v17 = vsel %vm583_vm0, %v1649_v10, 0.0  ;;  %v1073_v20 = vadd.f32 %v2621_v34, %v1072_v11 }
 0x1c0   : > { %v1425_v14 = vpop.f32.mrf.mxu2  ;;  %1716 = vadd.xlane.f32.xlu0 %v1715_v17 }
 0x1c1   : > { %v1426_v15 = vadd.f32 %v2699_v51, %v1425_v14  ;;  %1111 = vmatmul.bf16.gmra.mxu1 %v931_v12  ;;  %v1202_v28 = vmax.f32 %v1073_v20, 0.0 }
 0x1c2   : > { %v784_v18 = vpop.f32.mrf.mxu0 }
 0x1c3   : > { %v1582_v19 = vmax.f32 %v1426_v15, 0.0  ;;  %v785_v29 = vadd.f32 %v2557_v21, %v784_v18 }
 0x1c5   : > { %v1650_v22 = vmul.f32 %v2705_v56, %v1582_v19  ;;  %v887_v37 = vmax.f32 %v785_v29, 0.0 }
 0x1c6   : > { %v1074_v24 = vpop.f32.mrf.mxu1 }
 0x1c7   : > { %v1075_v25 = vadd.f32 %v2621_v34, %v1074_v24  ;;  %v1718_v26 = vsel %vm583_vm0, %v1650_v22, 0.0 }
 0x1c8   : > { %v1427_v27 = vpop.f32.mrf.mxu2  ;;  %1719 = vadd.xlane.f32.xlu1 %v1718_v26 }
 0x1c9   : > { %v1203_v30 = vmax.f32 %v1075_v25, 0.0  ;;  %v1428_v31 = vadd.f32 %v2699_v51, %v1427_v27 }
 0x1ca   : > { %v786_v32 = vpop.f32.mrf.mxu0 }
 0x1cb   : > { %v1583_v33 = vmax.f32 %v1428_v31, 0.0  ;;  %v787_v35 = vadd.f32 %v2557_v21, %v786_v32  ;;  %v1256_v36 = vpack.c.bf16 %v1203_v30, %v1202_v28 }
 0x1cd   : > { %v888_v38 = vmax.f32 %v787_v35, 0.0  ;;  %2328 = vmatmul.msk.bf16.gmra.mxu2 %vm1314_vm1, %v1256_v36  ;;  %v1651_v39 = vmul.f32 %v2705_v56, %v1583_v33 }
 0x1ce   : > { %v1077_v40 = vpop.f32.mrf.mxu1 }
 0x1cf   : > { %v932_v41 = vpack.c.bf16 %v888_v38, %v887_v37  ;;  %v1721_v42 = vsel %vm583_vm0, %v1651_v39, 0.0  ;;  %v1078_v47 = vadd.f32 %v2621_v34, %v1077_v40 }
 0x1d0   : > { %v1430_v43 = vpop.f32.mrf.mxu2  ;;  %1722 = vadd.xlane.f32.xlu1 %v1721_v42 }
 0x1d1   : > { %v1431_v44 = vadd.f32 %v2699_v51, %v1430_v43  ;;  %1116 = vmatmul.bf16.gmra.mxu1 %v932_v41  ;;  %v1204_v55 = vmax.f32 %v1078_v47, 0.0 }
 0x1d2   : > { %v789_v45 = vpop.f32.mrf.mxu0 }
 0x1d3   : > { %v1584_v46 = vmax.f32 %v1431_v44, 0.0  ;;  %v790_v57 = vadd.f32 %v2557_v21, %v789_v45 }
 0x1d5   : > { %v1652_v48 = vmul.f32 %v2705_v56, %v1584_v46  ;;  %v889_v0 = vmax.f32 %v790_v57, 0.0 }
 0x1d6   : > { %v1079_v50 = vpop.f32.mrf.mxu1 }
 0x1d7   : > { %v1080_v52 = vadd.f32 %v2621_v34, %v1079_v50  ;;  %v1724_v53 = vsel %vm583_vm0, %v1652_v48, 0.0 }
 0x1d8   : > { %v1432_v54 = vpop.f32.mrf.mxu2  ;;  %1725 = vadd.xlane.f32.xlu2 %v1724_v53 }
 0x1d9   : > { %v1205_v58 = vmax.f32 %v1080_v52, 0.0  ;;  %v1433_v59 = vadd.f32 %v2699_v51, %v1432_v54 }
 0x1da   : > { %v791_v60 = vpop.f32.mrf.mxu0 }
 0x1db   : > { %v1257_v61 = vpack.c.bf16 %v1205_v58, %v1204_v55  ;;  %v1585_v62 = vmax.f32 %v1433_v59, 0.0  ;;  %v792_v63 = vadd.f32 %v2557_v21, %v791_v60 }
 0x1dd   : > { %v890_v1 = vmax.f32 %v792_v63, 0.0  ;;  %2329 = vmatmul.msk.bf16.gmra.mxu2 %vm1314_vm1, %v1257_v61  ;;  %v1653_v2 = vmul.f32 %v2705_v56, %v1585_v62  ;;  %v814_v61 = vpop.f32.mrf.mxu3 }
 0x1de   : > { %v1082_v3 = vpop.f32.mrf.mxu1 }
 0x1df   : > { %v933_v9 = vpack.c.bf16 %v890_v1, %v889_v0  ;;  %v1727_v4 = vsel %vm583_vm0, %v1653_v2, 0.0  ;;  %v1083_v8 = vadd.f32 %v2621_v34, %v1082_v3 }
 0x1e0   : > { %v1435_v5 = vpop.f32.mrf.mxu2  ;;  %1728 = vadd.xlane.f32.xlu2 %v1727_v4 }
 0x1e1   : > { %v1436_v6 = vadd.f32 %v2699_v51, %v1435_v5  ;;  %1121 = vmatmul.bf16.gmra.mxu1 %v933_v9  ;;  %v1206_v14 = vmax.f32 %v1083_v8, 0.0 }
 0x1e2   : > { %v794_v13 = vpop.f32.mrf.mxu0 }
 0x1e3   : > { %v1586_v7 = vmax.f32 %v1436_v6, 0.0  ;;  %v795_v15 = vadd.f32 %v2557_v21, %v794_v13 }
 0x1e5   : > { %v1654_v16 = vmul.f32 %v2705_v56, %v1586_v7  ;;  %v891_v25 = vmax.f32 %v795_v15, 0.0 }
 0x1e6   : > { %v1084_v10 = vpop.f32.mrf.mxu1 }
 0x1e7   : > { %v1085_v11 = vadd.f32 %v2621_v34, %v1084_v10  ;;  %v1730_v12 = vsel %vm583_vm0, %v1654_v16, 0.0 }
 0x1e8   : > { %v1437_v17 = vpop.f32.mrf.mxu2  ;;  %1731 = vadd.xlane.f32.xlu0 %v1730_v12 }
 0x1e9   : > { %v1207_v18 = vmax.f32 %v1085_v11, 0.0  ;;  %v1438_v19 = vadd.f32 %v2699_v51, %v1437_v17  ;;  %v816_v11 = vpop.f32.mrf.mxu3 }
 0x1ea   : > { %v796_v20 = vpop.f32.mrf.mxu0 }
 0x1eb   : > { %v1258_v22 = vpack.c.bf16 %v1207_v18, %v1206_v14  ;;  %v1587_v23 = vmax.f32 %v1438_v19, 0.0  ;;  %v797_v24 = vadd.f32 %v2557_v21, %v796_v20 }
 0x1ed   : > { %v892_v26 = vmax.f32 %v797_v24, 0.0  ;;  %2330 = vmatmul.msk.bf16.gmra.mxu2 %vm1314_vm1, %v1258_v22  ;;  %v1655_v27 = vmul.f32 %v2705_v56, %v1587_v23 }
 0x1ee   : > { %v1087_v28 = vpop.f32.mrf.mxu1 }
 0x1ef   : > { %v934_v29 = vpack.c.bf16 %v892_v26, %v891_v25  ;;  %v1733_v30 = vsel %vm583_vm0, %v1655_v27, 0.0  ;;  %v1088_v36 = vadd.f32 %v2621_v34, %v1087_v28 }
 0x1f0   : > { %v1440_v31 = vpop.f32.mrf.mxu2  ;;  %1734 = vadd.xlane.f32.xlu1 %v1733_v30 }
 0x1f1   : > { %v1441_v32 = vadd.f32 %v2699_v51, %v1440_v31  ;;  %1126 = vmatmul.bf16.gmra.mxu1 %v934_v29  ;;  %v1208_v42 = vmax.f32 %v1088_v36, 0.0  ;;  %v2781_v28 = vpop.f32.mrf.mxu3 }
 0x1f2   : > { %v799_v33 = vpop.f32.mrf.mxu0 }
 0x1f3   : > { %v1588_v35 = vmax.f32 %v1441_v32, 0.0  ;;  %v800_v43 = vadd.f32 %v2557_v21, %v799_v33 }
 0x1f5   : > { %v1656_v37 = vmul.f32 %v2705_v56, %v1588_v35  ;;  %v893_v50 = vmax.f32 %v800_v43, 0.0 }
 0x1f6   : > { %v1089_v38 = vpop.f32.mrf.mxu1 }
 0x1f7   : > { %v1090_v39 = vadd.f32 %v2621_v34, %v1089_v38  ;;  %v1736_v40 = vsel %vm583_vm0, %v1656_v37, 0.0 }
 0x1f8   : > { %v1442_v41 = vpop.f32.mrf.mxu2  ;;  %1737 = vadd.xlane.f32.xlu2 %v1736_v40 }
 0x1f9   : > { %v1209_v44 = vmax.f32 %v1090_v39, 0.0  ;;  %v1443_v45 = vadd.f32 %v2699_v51, %v1442_v41 }
 0x1fa   : > { %v801_v46 = vpop.f32.mrf.mxu0 }
 0x1fb   : > { %v1259_v47 = vpack.c.bf16 %v1209_v44, %v1208_v42  ;;  %v1589_v48 = vmax.f32 %v1443_v45, 0.0  ;;  %v802_v49 = vadd.f32 %v2557_v21, %v801_v46 }
 0x1fd   : > { %v894_v52 = vmax.f32 %v802_v49, 0.0  ;;  %2331 = vmatmul.msk.bf16.gmra.mxu2 %vm1314_vm1, %v1259_v47  ;;  %v1657_v53 = vmul.f32 %v2705_v56, %v1589_v48  ;;  %v821_v48 = vpop.f32.mrf.mxu3 }
 0x1fe   : > { %v1092_v54 = vpop.f32.mrf.mxu1 }
 0x1ff   : > { %v935_v55 = vpack.c.bf16 %v894_v52, %v893_v50  ;;  %v1739_v57 = vsel %vm583_vm0, %v1657_v53, 0.0  ;;  %v1093_v63 = vadd.f32 %v2621_v34, %v1092_v54  ;;  %v815_v54 = vadd.f32 %v2557_v21, %v814_v61 }
 0x200   : > { %v1445_v58 = vpop.f32.mrf.mxu2  ;;  %1740 = vadd.xlane.f32.xlu0 %v1739_v57  ;;  %v817_v57 = vadd.f32 %v2557_v21, %v816_v11 }
 0x201   : > { %v1446_v59 = vadd.f32 %v2699_v51, %v1445_v58  ;;  %1131 = vmatmul.bf16.gmra.mxu1 %v935_v55  ;;  %v1210_v4 = vmax.f32 %v1093_v63, 0.0 }
 0x202   : > { %v804_v60 = vpop.f32.mrf.mxu0 }
 0x203   : > { %v1590_v62 = vmax.f32 %v1446_v59, 0.0  ;;  %v805_v5 = vadd.f32 %v2557_v21, %v804_v60 }
 0x205   : > { %v1658_v0 = vmul.f32 %v2705_v56, %v1590_v62  ;;  %v895_v12 = vmax.f32 %v805_v5, 0.0  ;;  %v2799_v62 = vld [vmem:[#allocation2] ss:$0 sm:$0xff] }
 0x206   : > { %v1094_v1 = vpop.f32.mrf.mxu1 }
 0x207   : > { %v1095_v2 = vadd.f32 %v2621_v34, %v1094_v1  ;;  %v1742_v3 = vsel %vm583_vm0, %v1658_v0, 0.0 }
 0x208   : > { %v1447_v9 = vpop.f32.mrf.mxu2  ;;  %1743 = vadd.xlane.f32.xlu1 %v1742_v3  ;;  %v824_v3 = vpop.f32.mrf.mxu3 }
 0x209   : > { %v1211_v6 = vmax.f32 %v1095_v2, 0.0  ;;  %v1448_v13 = vadd.f32 %v2699_v51, %v1447_v9  ;;  %v899_v2 = vmax.f32 %v815_v54, 0.0  ;;  %v900_v9 = vmax.f32 %v817_v57, 0.0 }
 0x20a   : > { %v806_v7 = vpop.f32.mrf.mxu0 }
 0x20b   : > { %v1260_v8 = vpack.c.bf16 %v1211_v6, %v1210_v4  ;;  %v1591_v16 = vmax.f32 %v1448_v13, 0.0  ;;  %v807_v10 = vadd.f32 %v2557_v21, %v806_v7 }
 0x20d   : > { %v896_v17 = vmax.f32 %v807_v10, 0.0  ;;  %2332 = vmatmul.msk.bf16.gmra.mxu2 %vm1314_vm1, %v1260_v8  ;;  %v1659_v14 = vmul.f32 %v2705_v56, %v1591_v16  ;;  %v938_v8 = vpack.c.bf16 %v900_v9, %v899_v2 }
 0x20e   : > { %v1097_v15 = vpop.f32.mrf.mxu1 }
 0x20f   : > { %v936_v18 = vpack.c.bf16 %v896_v17, %v895_v12  ;;  %v1745_v19 = vsel %vm583_vm0, %v1659_v14, 0.0  ;;  %v1098_v25 = vadd.f32 %v2621_v34, %v1097_v15 }
 0x210   : > { %v1450_v20 = vpop.f32.mrf.mxu2  ;;  %1746 = vadd.xlane.f32.xlu2 %v1745_v19  ;;  %v826_v14 = vpop.f32.mrf.mxu3 }
 0x211   : > { %v1451_v22 = vadd.f32 %v2699_v51, %v1450_v20  ;;  %1136 = vmatmul.bf16.vlgmr.msrb.gmra.mxu3 %v936_v18  ;;  %v1212_v32 = vmax.f32 %v1098_v25, 0.0  ;;  %v2822_v20 = vld [vmem:[%s3231_s2] ss:$0 sm:$0xff] }
 0x212   : > { %v809_v23 = vpop.f32.mrf.mxu0 }
 0x213   : > { %v1592_v24 = vmax.f32 %v1451_v22, 0.0  ;;  %v810_v33 = vadd.f32 %v2557_v21, %v809_v23  ;;  %v820_v22 = vadd.f32 %v2822_v20, %v2781_v28  ;;  %v822_v23 = vadd.f32 %v2822_v20, %v821_v48 }
 0x215   : > { %v1660_v26 = vmul.f32 %v2705_v56, %v1592_v24  ;;  %v897_v41 = vmax.f32 %v810_v33, 0.0 }
 0x216   : > { %v1099_v27 = vpop.f32.mrf.mxu1 }
 0x217   : > { %v1100_v29 = vadd.f32 %v2621_v34, %v1099_v27  ;;  %v1748_v30 = vsel %vm583_vm0, %v1660_v26, 0.0 }
 0x218   : > { %v1452_v31 = vpop.f32.mrf.mxu2  ;;  %1749 = vadd.xlane.f32.xlu0 %v1748_v30 }
 0x219   : > { %v1213_v35 = vmax.f32 %v1100_v29, 0.0  ;;  %v1453_v36 = vadd.f32 %v2699_v51, %v1452_v31  ;;  %v901_v31 = vmax.f32 %v820_v22, 0.0 }
 0x21a   : > { %v811_v37 = vpop.f32.mrf.mxu0 }
 0x21b   : > { %v1261_v38 = vpack.c.bf16 %v1213_v35, %v1212_v32  ;;  %v1593_v39 = vmax.f32 %v1453_v36, 0.0  ;;  %v812_v40 = vadd.f32 %v2557_v21, %v811_v37  ;;  %v902_v32 = vmax.f32 %v822_v23, 0.0 }
 0x21d   : > { %v898_v42 = vmax.f32 %v812_v40, 0.0  ;;  %2333 = vmatmul.msk.bf16.gmra.mxu2 %vm1314_vm1, %v1261_v38  ;;  %v1661_v43 = vmul.f32 %v2705_v56, %v1593_v39  ;;  %v829_v39 = vpop.f32.mrf.mxu3 }
 0x21e   : > { %v1102_v44 = vpop.f32.mrf.mxu1 }
 0x21f   : > { %v1751_v45 = vsel %vm583_vm0, %v1661_v43, 0.0  ;;  %v937_v46 = vpack.c.bf16 %v898_v42, %v897_v41  ;;  %v1103_v52 = vadd.f32 %v2621_v34, %v1102_v44  ;;  %v939_v41 = vpack.c.bf16 %v902_v32, %v901_v31 }
 0x220   : > { %v1455_v47 = vpop.f32.mrf.mxu2  ;;  %1752 = vadd.xlane.f32.xlu1 %v1751_v45 }
 0x221   : > { %v1456_v49 = vadd.f32 %v2699_v51, %v1455_v47  ;;  %1141 = vmatmul.bf16.gmra.mxu3 %v937_v46  ;;  %v1214_v63 = vmax.f32 %v1103_v52, 0.0  ;;  %v827_v52 = vadd.f32 %v2822_v20, %v826_v14  ;;  %v830_v14 = vadd.f32 %v2822_v20, %v829_v39 }
 0x223   : > { %v1594_v50 = vmax.f32 %v1456_v49, 0.0 }
 0x225   : > { %v1662_v53 = vmul.f32 %v2705_v56, %v1594_v50  ;;  %v825_v50 = vadd.f32 %v2822_v20, %v824_v3  ;;  %v831_v57 = vpop.f32.mrf.mxu3 }
 0x226   : > { %v1104_v55 = vpop.f32.mrf.mxu1 }
 0x227   : > { %v1105_v58 = vadd.f32 %v2621_v34, %v1104_v55  ;;  %v1754_v59 = vsel %vm583_vm0, %v1662_v53, 0.0 }
 0x228   : > { %v1457_v60 = vpop.f32.mrf.mxu2  ;;  %1755 = vadd.xlane.f32.xlu2 %v1754_v59 }
 0x229   : > { %v1215_v0 = vmax.f32 %v1105_v58, 0.0  ;;  %v1458_v1 = vadd.f32 %v2699_v51, %v1457_v60 }
 0x22b   : > { %v1262_v61 = vpack.c.bf16 %v1215_v0, %v1214_v63  ;;  %v1595_v4 = vmax.f32 %v1458_v1, 0.0  ;;  %v1714_v21 = vpop.xlane.xlu0 %1713  ;;  %v903_v63 = vmax.f32 %v825_v50, 0.0  ;;  %v904_v0 = vmax.f32 %v827_v52, 0.0 }
 0x22c   : > { %v1908_v5 = vadd.f32 %v2799_v62, %v1714_v21 }
 0x22d   : > { %2334 = vmatmul.msk.bf16.gmra.mxu2 %vm1314_vm1, %v1262_v61  ;;  %v1663_v6 = vmul.f32 %v2705_v56, %v1595_v4 }
 0x22e   : > { %1973 = vst.msk [vmem:[%s2805_s16] sm:$0xff] %vm1972_vm2, %v1908_v5  ;;  %v1107_v13 = vpop.f32.mrf.mxu1  ;;  %v940_v5 = vpack.c.bf16 %v904_v0, %v903_v63 }
 0x22f   : > { %v1757_v7 = vsel %vm583_vm0, %v1663_v6, 0.0  ;;  %v1108_v15 = vadd.f32 %v2621_v34, %v1107_v13 }
 0x230   : > { %v1460_v16 = vpop.f32.mrf.mxu2  ;;  %1758 = vadd.xlane.f32.xlu0 %v1757_v7  ;;  %v834_v7 = vpop.f32.mrf.mxu3 }
 0x231   : > { %v1461_v10 = vadd.f32 %v2699_v51, %v1460_v16  ;;  %1146 = vmatmul.bf16.gmra.mxu3 %v938_v8  ;;  %v1216_v27 = vmax.f32 %v1108_v15, 0.0  ;;  %v832_v15 = vadd.f32 %v2822_v20, %v831_v57 }
 0x233   : > { %v1596_v11 = vmax.f32 %v1461_v10, 0.0  ;;  %v1717_v12 = vpop.xlane.xlu0 %1716 }
 0x234   : > { %v1909_v17 = vadd.f32 %v2799_v62, %v1717_v12 }
 0x235   : > { %v1664_v18 = vmul.f32 %v2705_v56, %v1596_v11 }
 0x236   : > { %1974 = vst.msk [vmem:[%s2805_s16 + $0x8] sm:$0xff] %vm1972_vm2, %v1909_v17  ;;  %v1109_v19 = vpop.f32.mrf.mxu1 }
 0x237   : > { %v1110_v24 = vadd.f32 %v2621_v34, %v1109_v19  ;;  %v1760_v25 = vsel %vm583_vm0, %v1664_v18, 0.0 }
 0x238   : > { %v1462_v26 = vpop.f32.mrf.mxu2  ;;  %1761 = vadd.xlane.f32.xlu1 %v1760_v25 }
 0x239   : > { %v1217_v29 = vmax.f32 %v1110_v24, 0.0  ;;  %v1463_v30 = vadd.f32 %v2699_v51, %v1462_v26  ;;  %v905_v26 = vmax.f32 %v830_v14, 0.0 }
 0x23b   : > { %v1263_v33 = vpack.c.bf16 %v1217_v29, %v1216_v27  ;;  %v1597_v35 = vmax.f32 %v1463_v30, 0.0  ;;  %v1720_v36 = vpop.xlane.xlu1 %1719  ;;  %v906_v27 = vmax.f32 %v832_v15, 0.0 }
 0x23c   : > { %v1910_v28 = vadd.f32 %v2799_v62, %v1720_v36 }
 0x23d   : > { %2335 = vmatmul.msk.bf16.gmra.mxu2 %vm1314_vm1, %v1263_v33  ;;  %v1665_v37 = vmul.f32 %v2705_v56, %v1597_v35  ;;  %v836_v33 = vpop.f32.mrf.mxu3 }
 0x23e   : > { %1975 = vst.msk [vmem:[%s2805_s16 + $0x10] sm:$0xff] %vm1972_vm2, %v1910_v28  ;;  %v1112_v38 = vpop.f32.mrf.mxu1  ;;  %v941_v28 = vpack.c.bf16 %v906_v27, %v905_v26 }
 0x23f   : > { %v1763_v40 = vsel %vm583_vm0, %v1665_v37, 0.0  ;;  %v1113_v47 = vadd.f32 %v2621_v34, %v1112_v38 }
 0x240   : > { %v1465_v42 = vpop.f32.mrf.mxu2  ;;  %1764 = vadd.xlane.f32.xlu2 %v1763_v40 }
 0x241   : > { %v1466_v43 = vadd.f32 %v2699_v51, %v1465_v42  ;;  %1151 = vmatmul.bf16.gmra.mxu3 %v939_v41  ;;  %v1218_v58 = vmax.f32 %v1113_v47, 0.0  ;;  %v2875_v42 = vld [vmem:[%s3233_s4] ss:$0 sm:$0xff]  ;;  %v835_v47 = vadd.f32 %v2822_v20, %v834_v7 }
 0x243   : > { %v1598_v44 = vmax.f32 %v1466_v43, 0.0  ;;  %v1723_v45 = vpop.xlane.xlu1 %1722  ;;  %v907_v57 = vmax.f32 %v835_v47, 0.0 }
 0x244   : > { %v1911_v46 = vadd.f32 %v2799_v62, %v1723_v45 }
 0x245   : > { %v1666_v48 = vmul.f32 %v2705_v56, %v1598_v44 }
 0x246   : > { %1976 = vst.msk [vmem:[%s2805_s16 + $0x18] sm:$0xff] %vm1972_vm2, %v1911_v46  ;;  %v1114_v49 = vpop.f32.mrf.mxu1  ;;  %v839_v46 = vpop.f32.mrf.mxu3 }
 0x247   : > { %v1115_v53 = vadd.f32 %v2621_v34, %v1114_v49  ;;  %v1766_v54 = vsel %vm583_vm0, %v1666_v48, 0.0  ;;  %v837_v48 = vadd.f32 %v2822_v20, %v836_v33 }
 0x248   : > { %v1467_v55 = vpop.f32.mrf.mxu2  ;;  %1767 = vadd.xlane.f32.xlu0 %v1766_v54 }
 0x249   : > { %v1219_v59 = vmax.f32 %v1115_v53, 0.0  ;;  %v1468_v60 = vadd.f32 %v2699_v51, %v1467_v55 }
 0x24b   : > { %v1264_v1 = vpack.c.bf16 %v1219_v59, %v1218_v58  ;;  %v1599_v2 = vmax.f32 %v1468_v60, 0.0  ;;  %v1726_v9 = vpop.xlane.xlu2 %1725  ;;  %v908_v58 = vmax.f32 %v837_v48, 0.0 }
 0x24c   : > { %v1912_v3 = vadd.f32 %v2799_v62, %v1726_v9 }
 0x24d   : > { %2336 = vmatmul.msk.bf16.gmra.mxu2 %vm1314_vm1, %v1264_v1  ;;  %v1667_v61 = vmul.f32 %v2705_v56, %v1599_v2 }
 0x24e   : > { %1977 = vst.msk [vmem:[%s2805_s16 + $0x20] sm:$0xff] %vm1972_vm2, %v1912_v3  ;;  %v1117_v4 = vpop.f32.mrf.mxu1  ;;  %v942_v3 = vpack.c.bf16 %v908_v58, %v907_v57 }
 0x24f   : > { %v1769_v21 = vsel %vm583_vm0, %v1667_v61, 0.0  ;;  %v1118_v11 = vadd.f32 %v2621_v34, %v1117_v4  ;;  %v841_v4 = vpop.f32.mrf.mxu3 }
 0x250   : > { %v1470_v6 = vpop.f32.mrf.mxu2  ;;  %1770 = vadd.xlane.f32.xlu1 %v1769_v21 }
 0x251   : > { %v1471_v13 = vadd.f32 %v2699_v51, %v1470_v6  ;;  %1156 = vmatmul.bf16.gmra.mxu3 %v940_v5  ;;  %v1220_v23 = vmax.f32 %v1118_v11, 0.0  ;;  %v842_v11 = vadd.f32 %v2822_v20, %v841_v4 }
 0x253   : > { %v1600_v8 = vmax.f32 %v1471_v13, 0.0  ;;  %v1729_v16 = vpop.xlane.xlu2 %1728 }
 0x254   : > { %v1913_v10 = vadd.f32 %v2799_v62, %v1729_v16 }
 0x255   : > { %v1668_v12 = vmul.f32 %v2705_v56, %v1600_v8 }
 0x256   : > { %1978 = vst.msk [vmem:[%s2805_s16 + $0x28] sm:$0xff] %vm1972_vm2, %v1913_v10  ;;  %v1119_v17 = vpop.f32.mrf.mxu1  ;;  %v840_v10 = vadd.f32 %v2822_v20, %v839_v46 }
 0x257   : > { %v1120_v18 = vadd.f32 %v2621_v34, %v1119_v17  ;;  %v1772_v19 = vsel %vm583_vm0, %v1668_v12, 0.0 }
 0x258   : > { %v1472_v22 = vpop.f32.mrf.mxu2  ;;  %1773 = vadd.xlane.f32.xlu2 %v1772_v19 }
 0x259   : > { %v1221_v24 = vmax.f32 %v1120_v18, 0.0  ;;  %v1473_v25 = vadd.f32 %v2699_v51, %v1472_v22  ;;  %v844_v22 = vpop.f32.mrf.mxu3 }
 0x25b   : > { %v1265_v29 = vpack.c.bf16 %v1221_v24, %v1220_v23  ;;  %v1601_v30 = vmax.f32 %v1473_v25, 0.0  ;;  %v1732_v31 = vpop.xlane.xlu0 %1731  ;;  %v909_v23 = vmax.f32 %v840_v10, 0.0  ;;  %v910_v24 = vmax.f32 %v842_v11, 0.0 }
 0x25c   : > { %v1914_v32 = vadd.f32 %v2799_v62, %v1732_v31 }
 0x25d   : > { %2337 = vmatmul.msk.bf16.gmra.mxu2 %vm1314_vm1, %v1265_v29  ;;  %v1669_v34 = vmul.f32 %v2705_v56, %v1601_v30  ;;  %v943_v33 = vpack.c.bf16 %v910_v24, %v909_v23 }
 0x25e   : > { %1979 = vst.msk [vmem:[%s2805_s16 + $0x30] sm:$0xff] %vm1972_vm2, %v1914_v32  ;;  %v1122_v35 = vpop.f32.mrf.mxu1 }
 0x25f   : > { %v1775_v36 = vsel %vm583_vm0, %v1669_v34, 0.0  ;;  %v1123_v43 = vadd.f32 %v2875_v42, %v1122_v35 }
 0x260   : > { %v1475_v37 = vpop.f32.mrf.mxu2  ;;  %1776 = vadd.xlane.f32.xlu0 %v1775_v36 }
 0x261   : > { %v1476_v38 = vadd.f32 %v2699_v51, %v1475_v37  ;;  %1161 = vmatmul.bf16.gmra.mxu3 %v941_v28  ;;  %v1222_v53 = vmax.f32 %v1123_v43, 0.0  ;;  %v846_v37 = vpop.f32.mrf.mxu3  ;;  %v845_v43 = vadd.f32 %v2822_v20, %v844_v22 }
 0x263   : > { %v1602_v39 = vmax.f32 %v1476_v38, 0.0  ;;  %v1735_v40 = vpop.xlane.xlu1 %1734 }
 0x264   : > { %v1915_v41 = vadd.f32 %v2799_v62, %v1735_v40 }
 0x265   : > { %v1670_v44 = vmul.f32 %v2705_v56, %v1602_v39 }
 0x266   : > { %1980 = vst.msk [vmem:[%s2805_s16 + $0x38] sm:$0xff] %vm1972_vm2, %v1915_v41  ;;  %v1124_v45 = vpop.f32.mrf.mxu1 }
 0x267   : > { %v1125_v49 = vadd.f32 %v2875_v42, %v1124_v45  ;;  %v1778_v50 = vsel %vm583_vm0, %v1670_v44, 0.0  ;;  %v847_v44 = vadd.f32 %v2822_v20, %v846_v37 }
 0x268   : > { %v1477_v52 = vpop.f32.mrf.mxu2  ;;  %1779 = vadd.xlane.f32.xlu1 %v1778_v50 }
 0x269   : > { %v1223_v54 = vmax.f32 %v1125_v49, 0.0  ;;  %v1478_v55 = vadd.f32 %v2699_v51, %v1477_v52  ;;  %v911_v52 = vmax.f32 %v845_v43, 0.0 }
 0x26b   : > { %v1266_v59 = vpack.c.bf16 %v1223_v54, %v1222_v53  ;;  %v1603_v60 = vmax.f32 %v1478_v55, 0.0  ;;  %v1738_v63 = vpop.xlane.xlu2 %1737  ;;  %v912_v53 = vmax.f32 %v847_v44, 0.0 }
 0x26c   : > { %v1916_v0 = vadd.f32 %v2799_v62, %v1738_v63 }
 0x26d   : > { %2338 = vmatmul.msk.bf16.gmra.mxu2 %vm1314_vm1, %v1266_v59  ;;  %v1671_v1 = vmul.f32 %v2705_v56, %v1603_v60  ;;  %v944_v60 = vpack.c.bf16 %v912_v53, %v911_v52 }
 0x26e   : > { %1981 = vst.msk [vmem:[%s2805_s16 + $0x40] sm:$0xff] %vm1972_vm2, %v1916_v0  ;;  %v1127_v2 = vpop.f32.mrf.mxu1 }
 0x26f   : > { %v1781_v9 = vsel %vm583_vm0, %v1671_v1, 0.0  ;;  %v1128_v7 = vadd.f32 %v2875_v42, %v1127_v2 }
 0x270   : > { %v1480_v61 = vpop.f32.mrf.mxu2  ;;  %1782 = vadd.xlane.f32.xlu2 %v1781_v9 }
 0x271   : > { %v1481_v21 = vadd.f32 %v2699_v51, %v1480_v61  ;;  %1166 = vmatmul.bf16.gmra.mxu3 %v942_v3  ;;  %v1224_v15 = vmax.f32 %v1128_v7, 0.0 }
 0x273   : > { %v1604_v5 = vmax.f32 %v1481_v21, 0.0  ;;  %v1741_v6 = vpop.xlane.xlu0 %1740 }
 0x274   : > { %v1917_v13 = vadd.f32 %v2799_v62, %v1741_v6 }
 0x275   : > { %v1672_v8 = vmul.f32 %v2705_v56, %v1604_v5 }
 0x276   : > { %1982 = vst.msk [vmem:[%s2805_s16 + $0x48] sm:$0xff] %vm1972_vm2, %v1917_v13  ;;  %v1129_v16 = vpop.f32.mrf.mxu1 }
 0x277   : > { %v1130_v12 = vadd.f32 %v2875_v42, %v1129_v16  ;;  %v1784_v17 = vsel %vm583_vm0, %v1672_v8, 0.0 }
 0x278   : > { %v1482_v14 = vpop.f32.mrf.mxu2  ;;  %1785 = vadd.xlane.f32.xlu0 %v1784_v17 }
 0x279   : > { %v1225_v18 = vmax.f32 %v1130_v12, 0.0  ;;  %v1483_v19 = vadd.f32 %v2699_v51, %v1482_v14 }
 0x27b   : > { %v1267_v25 = vpack.c.bf16 %v1225_v18, %v1224_v15  ;;  %v1605_v26 = vmax.f32 %v1483_v19, 0.0  ;;  %v1744_v27 = vpop.xlane.xlu1 %1743 }
 0x27c   : > { %v1918_v29 = vadd.f32 %v2799_v62, %v1744_v27 }
 0x27d   : > { %2339 = vmatmul.msk.bf16.gmra.mxu2 %vm1314_vm1, %v1267_v25  ;;  %v1673_v30 = vmul.f32 %v2705_v56, %v1605_v26 }
 0x27e   : > { %1983 = vst.msk [vmem:[%s2805_s16 + $0x50] sm:$0xff] %vm1972_vm2, %v1918_v29  ;;  %v1132_v31 = vpop.f32.mrf.mxu1 }
 0x27f   : > { %v1787_v32 = vsel %vm583_vm0, %v1673_v30, 0.0  ;;  %v1133_v39 = vadd.f32 %v2875_v42, %v1132_v31 }
 0x280   : > { %v1485_v34 = vpop.f32.mrf.mxu2  ;;  %1788 = vadd.xlane.f32.xlu1 %v1787_v32 }
 0x281   : > { %v1486_v35 = vadd.f32 %v2699_v51, %v1485_v34  ;;  %1171 = vmatmul.bf16.gmra.mxu3 %v943_v33  ;;  %v1226_v48 = vmax.f32 %v1133_v39, 0.0 }
 0x283   : > { %v1606_v36 = vmax.f32 %v1486_v35, 0.0  ;;  %v1747_v28 = vpop.xlane.xlu2 %1746 }
 0x284   : > { %v1919_v38 = vadd.f32 %v2799_v62, %v1747_v28 }
 0x285   : > { %v1674_v40 = vmul.f32 %v2705_v56, %v1606_v36 }
 0x286   : > { %1984 = vst.msk [vmem:[%s2805_s16 + $0x58] sm:$0xff] %vm1972_vm2, %v1919_v38  ;;  %v1134_v41 = vpop.f32.mrf.mxu1 }
 0x287   : > { %v1135_v45 = vadd.f32 %v2875_v42, %v1134_v41  ;;  %v1790_v46 = vsel %vm583_vm0, %v1674_v40, 0.0 }
 0x288   : > { %v1487_v47 = vpop.f32.mrf.mxu2  ;;  %1791 = vadd.xlane.f32.xlu2 %v1790_v46 }
 0x289   : > { %v1227_v49 = vmax.f32 %v1135_v45, 0.0  ;;  %v1488_v50 = vadd.f32 %v2699_v51, %v1487_v47 }
 0x28b   : > { %v1268_v54 = vpack.c.bf16 %v1227_v49, %v1226_v48  ;;  %v1607_v55 = vmax.f32 %v1488_v50, 0.0  ;;  %v1750_v57 = vpop.xlane.xlu0 %1749 }
 0x28c   : > { %v1920_v58 = vadd.f32 %v2799_v62, %v1750_v57 }
 0x28d   : > { %2340 = vmatmul.msk.bf16.gmra.mxu2 %vm1314_vm1, %v1268_v54  ;;  %v1675_v20 = vmul.f32 %v2705_v56, %v1607_v55 }
 0x28e   : > { %1985 = vst.msk [vmem:[%s2805_s16 + $0x60] sm:$0xff] %vm1972_vm2, %v1920_v58 }
 0x28f   : > { %v1793_v59 = vsel %vm583_vm0, %v1675_v20, 0.0 }
 0x290   : > { %v1490_v63 = vpop.f32.mrf.mxu2  ;;  %1794 = vadd.xlane.f32.xlu0 %v1793_v59 }
 0x291   : > { %v1491_v0 = vadd.f32 %v2699_v51, %v1490_v63  ;;  %1176 = vmatmul.bf16.gmra.mxu3 %v944_v60 }
 0x293   : > { %v1608_v1 = vmax.f32 %v1491_v0, 0.0  ;;  %v1753_v2 = vpop.xlane.xlu1 %1752 }
 0x294   : > { %v1921_v9 = vadd.f32 %v2799_v62, %v1753_v2  ;;  %v1137_v3 = vpop.f32.mrf.mxu3  ;;  %v2973_v2 = vld [vmem:[%s3235_s6] ss:$0 sm:$0xff] }
 0x295   : > { %v1676_v61 = vmul.f32 %v2705_v56, %v1608_v1  ;;  %v1138_v6 = vadd.f32 %v2875_v42, %v1137_v3 }
 0x296   : > { %1986 = vst.msk [vmem:[%s2805_s16 + $0x68] sm:$0xff] %vm1972_vm2, %v1921_v9 }
 0x297   : > { %v1796_v4 = vsel %vm583_vm0, %v1676_v61, 0.0  ;;  %v1228_v12 = vmax.f32 %v1138_v6, 0.0 }
 0x298   : > { %v1492_v21 = vpop.f32.mrf.mxu2  ;;  %1797 = vadd.xlane.f32.xlu1 %v1796_v4 }
 0x299   : > { %v1493_v5 = vadd.f32 %v2699_v51, %v1492_v21  ;;  %v2981_v21 = vld [vmem:[%s3236_s7] ss:$0 sm:$0xff] }
 0x29b   : > { %v1609_v13 = vmax.f32 %v1493_v5, 0.0  ;;  %v1756_v7 = vpop.xlane.xlu2 %1755 }
 0x29c   : > { %v1922_v8 = vadd.f32 %v2799_v62, %v1756_v7  ;;  %v1139_v16 = vpop.f32.mrf.mxu3 }
 0x29d   : > { %v1140_v10 = vadd.f32 %v2875_v42, %v1139_v16  ;;  %v1677_v11 = vmul.f32 %v2705_v56, %v1609_v13 }
 0x29e   : > { %1987 = vst.msk [vmem:[%s2805_s16 + $0x70] sm:$0xff] %vm1972_vm2, %v1922_v8 }
 0x29f   : > { %v1229_v17 = vmax.f32 %v1140_v10, 0.0  ;;  %v1799_v14 = vsel %vm583_vm0, %v1677_v11, 0.0 }
 0x2a0   : > { %v1495_v15 = vpop.f32.mrf.mxu2  ;;  %1800 = vadd.xlane.f32.xlu2 %v1799_v14 }
 0x2a1   : > { %v1269_v18 = vpack.c.bf16 %v1229_v17, %v1228_v12  ;;  %v1496_v19 = vadd.f32 %v2699_v51, %v1495_v15 }
 0x2a3   : > { %v1610_v22 = vmax.f32 %v1496_v19, 0.0  ;;  %2341 = vmatmul.msk.bf16.gmra.mxu2 %vm1314_vm1, %v1269_v18  ;;  %v1759_v23 = vpop.xlane.xlu0 %1758 }
 0x2a4   : > { %v1923_v24 = vadd.f32 %v2799_v62, %v1759_v23  ;;  %v1142_v25 = vpop.f32.mrf.mxu3 }
 0x2a5   : > { %v1678_v26 = vmul.f32 %v2705_v56, %v1610_v22  ;;  %v1143_v31 = vadd.f32 %v2875_v42, %v1142_v25 }
 0x2a6   : > { %1988 = vst.msk [vmem:[%s2805_s16 + $0x78] sm:$0xff] %vm1972_vm2, %v1923_v24 }
 0x2a7   : > { %v1802_v27 = vsel %vm583_vm0, %v1678_v26, 0.0  ;;  %v1230_v37 = vmax.f32 %v1143_v31, 0.0 }
 0x2a8   : > { %v1497_v29 = vpop.f32.mrf.mxu2  ;;  %1803 = vadd.xlane.f32.xlu0 %v1802_v27 }
 0x2a9   : > { %v1498_v30 = vadd.f32 %v2699_v51, %v1497_v29 }
 0x2ab   : > { %v1611_v32 = vmax.f32 %v1498_v30, 0.0  ;;  %v1762_v33 = vpop.xlane.xlu1 %1761 }
 0x2ac   : > { %v1924_v34 = vadd.f32 %v2799_v62, %v1762_v33  ;;  %v1144_v35 = vpop.f32.mrf.mxu3 }
 0x2ad   : > { %v1145_v36 = vadd.f32 %v2875_v42, %v1144_v35  ;;  %v1679_v28 = vmul.f32 %v2705_v56, %v1611_v32 }
 0x2ae   : > { %1989 = vst.msk [vmem:[%s2805_s16 + $0x80] sm:$0xff] %vm1972_vm2, %v1924_v34 }
 0x2af   : > { %v1231_v38 = vmax.f32 %v1145_v36, 0.0  ;;  %v1805_v39 = vsel %vm583_vm0, %v1679_v28, 0.0 }
 0x2b0   : > { %v1500_v40 = vpop.f32.mrf.mxu2  ;;  %1806 = vadd.xlane.f32.xlu1 %v1805_v39 }
 0x2b1   : > { %v1270_v41 = vpack.c.bf16 %v1231_v38, %v1230_v37  ;;  %v1501_v43 = vadd.f32 %v2699_v51, %v1500_v40 }
 0x2b3   : > { %v1612_v44 = vmax.f32 %v1501_v43, 0.0  ;;  %2342 = vmatmul.msk.bf16.vlgmr.msra.gmra.mxu3 %vm1314_vm1, %v1270_v41  ;;  %v1765_v45 = vpop.xlane.xlu2 %1764 }
 0x2b4   : > { %v1925_v46 = vadd.f32 %v2799_v62, %v1765_v45  ;;  %v1147_v47 = vpop.f32.mrf.mxu3 }
 0x2b5   : > { %v1680_v48 = vmul.f32 %v2705_v56, %v1612_v44  ;;  %v1148_v53 = vadd.f32 %v2875_v42, %v1147_v47 }
 0x2b6   : > { %1990 = vst.msk [vmem:[%s2805_s16 + $0x88] sm:$0xff] %vm1972_vm2, %v1925_v46 }
 0x2b7   : > { %v1808_v49 = vsel %vm583_vm0, %v1680_v48, 0.0  ;;  %v1232_v60 = vmax.f32 %v1148_v53, 0.0 }
 0x2b8   : > { %v1502_v50 = vpop.f32.mrf.mxu2  ;;  %1809 = vadd.xlane.f32.xlu2 %v1808_v49 }
 0x2b9   : > { %v1503_v52 = vadd.f32 %v2699_v51, %v1502_v50 }
 0x2bb   : > { %v1613_v54 = vmax.f32 %v1503_v52, 0.0  ;;  %v1768_v55 = vpop.xlane.xlu0 %1767 }
 0x2bc   : > { %v1926_v57 = vadd.f32 %v2799_v62, %v1768_v55  ;;  %v1149_v58 = vpop.f32.mrf.mxu3 }
 0x2bd   : > { %v1150_v20 = vadd.f32 %v2875_v42, %v1149_v58  ;;  %v1681_v59 = vmul.f32 %v2705_v56, %v1613_v54 }
 0x2be   : > { %1991 = vst.msk [vmem:[%s2805_s16 + $0x90] sm:$0xff] %vm1972_vm2, %v1926_v57 }
 0x2bf   : > { %v1233_v63 = vmax.f32 %v1150_v20, 0.0  ;;  %v1811_v0 = vsel %vm583_vm0, %v1681_v59, 0.0 }
 0x2c0   : > { %v1505_v1 = vpop.f32.mrf.mxu2  ;;  %1812 = vadd.xlane.f32.xlu0 %v1811_v0 }
 0x2c1   : > { %v1271_v51 = vpack.c.bf16 %v1233_v63, %v1232_v60  ;;  %v1506_v9 = vadd.f32 %v2973_v2, %v1505_v1 }
 0x2c3   : > { %v1614_v3 = vmax.f32 %v1506_v9, 0.0  ;;  %2343 = vmatmul.msk.bf16.gmra.mxu3 %vm1314_vm1, %v1271_v51  ;;  %v1771_v56 = vpop.xlane.xlu1 %1770 }
 0x2c4   : > { %v1927_v61 = vadd.f32 %v2799_v62, %v1771_v56  ;;  %v1152_v4 = vpop.f32.mrf.mxu3 }
 0x2c5   : > { %v1682_v5 = vmul.f32 %v2981_v21, %v1614_v3  ;;  %v1153_v8 = vadd.f32 %v2875_v42, %v1152_v4 }
 0x2c6   : > { %1992 = vst.msk [vmem:[%s2805_s16 + $0x98] sm:$0xff] %vm1972_vm2, %v1927_v61 }
 0x2c7   : > { %v1814_v6 = vsel %vm583_vm0, %v1682_v5, 0.0  ;;  %v1234_v15 = vmax.f32 %v1153_v8, 0.0 }
 0x2c8   : > { %v1507_v13 = vpop.f32.mrf.mxu2  ;;  %1815 = vadd.xlane.f32.xlu1 %v1814_v6 }
 0x2c9   : > { %v1508_v7 = vadd.f32 %v2973_v2, %v1507_v13 }
 0x2cb   : > { %v1615_v16 = vmax.f32 %v1508_v7, 0.0  ;;  %v1774_v10 = vpop.xlane.xlu2 %1773 }
 0x2cc   : > { %v1928_v11 = vadd.f32 %v2799_v62, %v1774_v10  ;;  %v1154_v12 = vpop.f32.mrf.mxu3 }
 0x2cd   : > { %v1155_v17 = vadd.f32 %v2875_v42, %v1154_v12  ;;  %v1683_v14 = vmul.f32 %v2981_v21, %v1615_v16 }
 0x2ce   : > { %1993 = vst.msk [vmem:[%s2805_s16 + $0xa0] sm:$0xff] %vm1972_vm2, %v1928_v11 }
 0x2cf   : > { %v1235_v18 = vmax.f32 %v1155_v17, 0.0  ;;  %v1817_v19 = vsel %vm583_vm0, %v1683_v14, 0.0 }
 0x2d0   : > { %v1510_v22 = vpop.f32.mrf.mxu2  ;;  %1818 = vadd.xlane.f32.xlu2 %v1817_v19 }
 0x2d1   : > { %v1272_v23 = vpack.c.bf16 %v1235_v18, %v1234_v15  ;;  %v1511_v24 = vadd.f32 %v2973_v2, %v1510_v22 }
 0x2d3   : > { %v1616_v25 = vmax.f32 %v1511_v24, 0.0  ;;  %2344 = vmatmul.msk.bf16.gmra.mxu3 %vm1314_vm1, %v1272_v23  ;;  %v1777_v26 = vpop.xlane.xlu0 %1776 }
 0x2d4   : > { %v1929_v27 = vadd.f32 %v2799_v62, %v1777_v26  ;;  %v1157_v29 = vpop.f32.mrf.mxu3 }
 0x2d5   : > { %v1684_v30 = vmul.f32 %v2981_v21, %v1616_v25  ;;  %v1158_v34 = vadd.f32 %v2875_v42, %v1157_v29 }
 0x2d6   : > { %1994 = vst.msk [vmem:[%s2805_s16 + $0xa8] sm:$0xff] %vm1972_vm2, %v1929_v27 }
 0x2d7   : > { %v1820_v31 = vsel %vm583_vm0, %v1684_v30, 0.0  ;;  %v1236_v40 = vmax.f32 %v1158_v34, 0.0 }
 0x2d8   : > { %v1512_v32 = vpop.f32.mrf.mxu2  ;;  %1821 = vadd.xlane.f32.xlu0 %v1820_v31 }
 0x2d9   : > { %v1513_v33 = vadd.f32 %v2973_v2, %v1512_v32 }
 0x2db   : > { %v1617_v35 = vmax.f32 %v1513_v33, 0.0  ;;  %v1780_v36 = vpop.xlane.xlu1 %1779 }
 0x2dc   : > { %v1930_v28 = vadd.f32 %v2799_v62, %v1780_v36  ;;  %v1159_v37 = vpop.f32.mrf.mxu3 }
 0x2dd   : > { %v1160_v38 = vadd.f32 %v2875_v42, %v1159_v37  ;;  %v1685_v39 = vmul.f32 %v2981_v21, %v1617_v35 }
 0x2de   : > { %1995 = vst.msk [vmem:[%s2805_s16 + $0xb0] sm:$0xff] %vm1972_vm2, %v1930_v28 }
 0x2df   : > { %v1237_v41 = vmax.f32 %v1160_v38, 0.0  ;;  %v1823_v43 = vsel %vm583_vm0, %v1685_v39, 0.0 }
 0x2e0   : > { %v1515_v44 = vpop.f32.mrf.mxu2  ;;  %1824 = vadd.xlane.f32.xlu1 %v1823_v43 }
 0x2e1   : > { %v1273_v45 = vpack.c.bf16 %v1237_v41, %v1236_v40  ;;  %v1516_v46 = vadd.f32 %v2973_v2, %v1515_v44 }
 0x2e3   : > { %v1618_v47 = vmax.f32 %v1516_v46, 0.0  ;;  %2345 = vmatmul.msk.bf16.gmra.mxu3 %vm1314_vm1, %v1273_v45  ;;  %v1783_v48 = vpop.xlane.xlu2 %1782 }
 0x2e4   : > { %v1931_v49 = vadd.f32 %v2799_v62, %v1783_v48  ;;  %v1162_v50 = vpop.f32.mrf.mxu3 }
 0x2e5   : > { %v1686_v52 = vmul.f32 %v2981_v21, %v1618_v47  ;;  %v1163_v57 = vadd.f32 %v2875_v42, %v1162_v50 }
 0x2e6   : > { %1996 = vst.msk [vmem:[%s2805_s16 + $0xb8] sm:$0xff] %vm1972_vm2, %v1931_v49 }
 0x2e7   : > { %v1826_v53 = vsel %vm583_vm0, %v1686_v52, 0.0  ;;  %v1238_v1 = vmax.f32 %v1163_v57, 0.0 }
 0x2e8   : > { %v1517_v54 = vpop.f32.mrf.mxu2  ;;  %1827 = vadd.xlane.f32.xlu2 %v1826_v53 }
 0x2e9   : > { %v1518_v55 = vadd.f32 %v2973_v2, %v1517_v54 }
 0x2eb   : > { %v1619_v58 = vmax.f32 %v1518_v55, 0.0  ;;  %v1786_v20 = vpop.xlane.xlu0 %1785 }
 0x2ec   : > { %v1932_v59 = vadd.f32 %v2799_v62, %v1786_v20  ;;  %v1164_v60 = vpop.f32.mrf.mxu3 }
 0x2ed   : > { %v1165_v63 = vadd.f32 %v2875_v42, %v1164_v60  ;;  %v1687_v0 = vmul.f32 %v2981_v21, %v1619_v58 }
 0x2ee   : > { %1997 = vst.msk [vmem:[%s2805_s16 + $0xc0] sm:$0xff] %vm1972_vm2, %v1932_v59 }
 0x2ef   : > { %v1239_v51 = vmax.f32 %v1165_v63, 0.0  ;;  %v1829_v9 = vsel %vm583_vm0, %v1687_v0, 0.0 }
 0x2f0   : > { %v1520_v3 = vpop.f32.mrf.mxu2  ;;  %1830 = vadd.xlane.f32.xlu0 %v1829_v9 }
 0x2f1   : > { %v1274_v56 = vpack.c.bf16 %v1239_v51, %v1238_v1  ;;  %v1521_v61 = vadd.f32 %v2973_v2, %v1520_v3 }
 0x2f3   : > { %v1620_v4 = vmax.f32 %v1521_v61, 0.0  ;;  %2346 = vmatmul.msk.bf16.gmra.mxu3 %vm1314_vm1, %v1274_v56  ;;  %v1789_v5 = vpop.xlane.xlu1 %1788 }
 0x2f4   : > { %v1933_v6 = vadd.f32 %v2799_v62, %v1789_v5  ;;  %v1167_v13 = vpop.f32.mrf.mxu3 }
 0x2f5   : > { %v1688_v7 = vmul.f32 %v2981_v21, %v1620_v4  ;;  %v1168_v11 = vadd.f32 %v2875_v42, %v1167_v13 }
 0x2f6   : > { %1998 = vst.msk [vmem:[%s2805_s16 + $0xc8] sm:$0xff] %vm1972_vm2, %v1933_v6 }
 0x2f7   : > { %v1832_v8 = vsel %vm583_vm0, %v1688_v7, 0.0  ;;  %v1240_v22 = vmax.f32 %v1168_v11, 0.0 }
 0x2f8   : > { %v1522_v16 = vpop.f32.mrf.mxu2  ;;  %1833 = vadd.xlane.f32.xlu1 %v1832_v8 }
 0x2f9   : > { %v1523_v10 = vadd.f32 %v2973_v2, %v1522_v16 }
 0x2fb   : > { %v1621_v12 = vmax.f32 %v1523_v10, 0.0  ;;  %v1792_v17 = vpop.xlane.xlu2 %1791 }
 0x2fc   : > { %v1934_v14 = vadd.f32 %v2799_v62, %v1792_v17  ;;  %v1169_v15 = vpop.f32.mrf.mxu3 }
 0x2fd   : > { %v1170_v18 = vadd.f32 %v2875_v42, %v1169_v15  ;;  %v1689_v19 = vmul.f32 %v2981_v21, %v1621_v12 }
 0x2fe   : > { %1999 = vst.msk [vmem:[%s2805_s16 + $0xd0] sm:$0xff] %vm1972_vm2, %v1934_v14 }
 0x2ff   : > { %v1241_v23 = vmax.f32 %v1170_v18, 0.0  ;;  %v1835_v24 = vsel %vm583_vm0, %v1689_v19, 0.0 }
 0x300   : > { %v1525_v25 = vpop.f32.mrf.mxu2  ;;  %1836 = vadd.xlane.f32.xlu2 %v1835_v24 }
 0x301   : > { %v1275_v26 = vpack.c.bf16 %v1241_v23, %v1240_v22  ;;  %v1526_v27 = vadd.f32 %v2973_v2, %v1525_v25 }
 0x303   : > { %v1622_v29 = vmax.f32 %v1526_v27, 0.0  ;;  %2347 = vmatmul.msk.bf16.gmra.mxu3 %vm1314_vm1, %v1275_v26  ;;  %v1795_v30 = vpop.xlane.xlu0 %1794 }
 0x304   : > { %v1935_v31 = vadd.f32 %v2799_v62, %v1795_v30  ;;  %v1172_v32 = vpop.f32.mrf.mxu3 }
 0x305   : > { %v1690_v33 = vmul.f32 %v2981_v21, %v1622_v29  ;;  %v1173_v28 = vadd.f32 %v2875_v42, %v1172_v32 }
 0x306   : > { %2000 = vst.msk [vmem:[%s2805_s16 + $0xd8] sm:$0xff] %vm1972_vm2, %v1935_v31 }
 0x307   : > { %v1838_v34 = vsel %vm583_vm0, %v1690_v33, 0.0  ;;  %v1242_v44 = vmax.f32 %v1173_v28, 0.0 }
 0x308   : > { %v1527_v35 = vpop.f32.mrf.mxu2  ;;  %1839 = vadd.xlane.f32.xlu0 %v1838_v34 }
 0x309   : > { %v1528_v36 = vadd.f32 %v2973_v2, %v1527_v35 }
 0x30b   : > { %v1623_v37 = vmax.f32 %v1528_v36, 0.0  ;;  %v1798_v38 = vpop.xlane.xlu1 %1797 }
 0x30c   : > { %v1936_v39 = vadd.f32 %v2799_v62, %v1798_v38  ;;  %v1174_v40 = vpop.f32.mrf.mxu3 }
 0x30d   : > { %v1175_v41 = vadd.f32 %v2875_v42, %v1174_v40  ;;  %v1691_v43 = vmul.f32 %v2981_v21, %v1623_v37 }
 0x30e   : > { %2001 = vst.msk [vmem:[%s2805_s16 + $0xe0] sm:$0xff] %vm1972_vm2, %v1936_v39 }
 0x30f   : > { %v1243_v45 = vmax.f32 %v1175_v41, 0.0  ;;  %v1841_v46 = vsel %vm583_vm0, %v1691_v43, 0.0 }
 0x310   : > { %v1530_v47 = vpop.f32.mrf.mxu2  ;;  %1842 = vadd.xlane.f32.xlu1 %v1841_v46 }
 0x311   : > { %v1276_v48 = vpack.c.bf16 %v1243_v45, %v1242_v44  ;;  %v1531_v49 = vadd.f32 %v2973_v2, %v1530_v47 }
 0x313   : > { %v1624_v50 = vmax.f32 %v1531_v49, 0.0  ;;  %2348 = vmatmul.msk.bf16.gmra.mxu3 %vm1314_vm1, %v1276_v48  ;;  %v1801_v52 = vpop.xlane.xlu2 %1800 }
 0x314   : > { %v1937_v53 = vadd.f32 %v2799_v62, %v1801_v52  ;;  %v1177_v54 = vpop.f32.mrf.mxu3 }
 0x315   : > { %v1692_v55 = vmul.f32 %v2981_v21, %v1624_v50  ;;  %v1178_v59 = vadd.f32 %v2875_v42, %v1177_v54 }
 0x316   : > { %2002 = vst.msk [vmem:[%s2805_s16 + $0xe8] sm:$0xff] %vm1972_vm2, %v1937_v53 }
 0x317   : > { %v1844_v57 = vsel %vm583_vm0, %v1692_v55, 0.0  ;;  %v1244_v3 = vmax.f32 %v1178_v59, 0.0 }
 0x318   : > { %v1532_v58 = vpop.f32.mrf.mxu2  ;;  %1845 = vadd.xlane.f32.xlu2 %v1844_v57 }
 0x319   : > { %v1533_v20 = vadd.f32 %v2973_v2, %v1532_v58 }
 0x31b   : > { %v1625_v60 = vmax.f32 %v1533_v20, 0.0  ;;  %v1804_v63 = vpop.xlane.xlu0 %1803  ;;  %v3112_v20 = vld [vmem:[#allocation2] ss:$0 sm:$0xff] }
 0x31c   : > { %v1938_v0 = vadd.f32 %v2799_v62, %v1804_v63  ;;  %v1179_v1 = vpop.f32.mrf.mxu3 }
 0x31d   : > { %v1180_v51 = vadd.f32 %v2875_v42, %v1179_v1  ;;  %v1693_v9 = vmul.f32 %v2981_v21, %v1625_v60 }
 0x31e   : > { %2003 = vst.msk [vmem:[%s2805_s16 + $0xf0] sm:$0xff] %vm1972_vm2, %v1938_v0 }
 0x31f   : > { %v1245_v56 = vmax.f32 %v1180_v51, 0.0  ;;  %v1847_v61 = vsel %vm583_vm0, %v1693_v9, 0.0 }
 0x320   : > { %1848 = vadd.xlane.f32.xlu0 %v1847_v61 }
 0x321   : > { %v1277_v4 = vpack.c.bf16 %v1245_v56, %v1244_v3 }
 0x323   : > { %2349 = vmatmul.msk.bf16.gmra.mxu3 %vm1314_vm1, %v1277_v4  ;;  %v1807_v5 = vpop.xlane.xlu1 %1806 }
 0x324   : > { %v1939_v6 = vadd.f32 %v2799_v62, %v1807_v5 }
 0x326   : > { %2004 = vst.msk [vmem:[%s2805_s16 + $0xf8] sm:$0xff] %vm1972_vm2, %v1939_v6  ;;  %v1535_v13 = vpop.f32.mrf.mxu2 }
 0x327   : > { %v1536_v42 = vadd.f32 %v2973_v2, %v1535_v13 }
 0x329   : > { %v1626_v7 = vmax.f32 %v1536_v42, 0.0 }
 0x32b   : > { %v1810_v8 = vpop.xlane.xlu2 %1809  ;;  %v1694_v16 = vmul.f32 %v2981_v21, %v1626_v7 }
 0x32c   : > { %v1940_v10 = vadd.f32 %v2799_v62, %v1810_v8 }
 0x32d   : > { %v1850_v11 = vsel %vm583_vm0, %v1694_v16, 0.0 }
 0x32e   : > { %2005 = vst.msk [vmem:[%s2805_s16 + $0x100] sm:$0xff] %vm1972_vm2, %v1940_v10  ;;  %v1537_v12 = vpop.f32.mrf.mxu2  ;;  %1851 = vadd.xlane.f32.xlu1 %v1850_v11 }
 0x32f   : > { %v1538_v17 = vadd.f32 %v2973_v2, %v1537_v12 }
 0x331   : > { %v1627_v14 = vmax.f32 %v1538_v17, 0.0 }
 0x333   : > { %v1813_v15 = vpop.xlane.xlu0 %1812  ;;  %v1695_v18 = vmul.f32 %v2981_v21, %v1627_v14 }
 0x334   : > { %v1941_v19 = vadd.f32 %v2799_v62, %v1813_v15 }
 0x335   : > { %v1853_v22 = vsel %vm583_vm0, %v1695_v18, 0.0 }
 0x336   : > { %2006 = vst.msk [vmem:[%s2805_s16 + $0x108] sm:$0xff] %vm1972_vm2, %v1941_v19  ;;  %v1540_v23 = vpop.f32.mrf.mxu3  ;;  %1854 = vadd.xlane.f32.xlu2 %v1853_v22 }
 0x337   : > { %v1541_v24 = vadd.f32 %v2973_v2, %v1540_v23 }
 0x339   : > { %v1628_v25 = vmax.f32 %v1541_v24, 0.0 }
 0x33b   : > { %v1816_v26 = vpop.xlane.xlu1 %1815  ;;  %v1696_v27 = vmul.f32 %v2981_v21, %v1628_v25 }
 0x33c   : > { %v1942_v29 = vadd.f32 %v2799_v62, %v1816_v26 }
 0x33d   : > { %v1856_v30 = vsel %vm583_vm0, %v1696_v27, 0.0 }
 0x33e   : > { %2007 = vst.msk [vmem:[%s2805_s16 + $0x110] sm:$0xff] %vm1972_vm2, %v1942_v29  ;;  %v1542_v31 = vpop.f32.mrf.mxu3  ;;  %1857 = vadd.xlane.f32.xlu0 %v1856_v30 }
 0x33f   : > { %v1543_v32 = vadd.f32 %v2973_v2, %v1542_v31 }
 0x341   : > { %v1629_v33 = vmax.f32 %v1543_v32, 0.0 }
 0x343   : > { %v1819_v34 = vpop.xlane.xlu2 %1818  ;;  %v1697_v35 = vmul.f32 %v2981_v21, %v1629_v33 }
 0x344   : > { %v1943_v36 = vadd.f32 %v2799_v62, %v1819_v34 }
 0x345   : > { %v1859_v28 = vsel %vm583_vm0, %v1697_v35, 0.0 }
 0x346   : > { %2008 = vst.msk [vmem:[%s2805_s16 + $0x118] sm:$0xff] %vm1972_vm2, %v1943_v36  ;;  %v1545_v37 = vpop.f32.mrf.mxu3  ;;  %1860 = vadd.xlane.f32.xlu1 %v1859_v28 }
 0x347   : > { %v1546_v38 = vadd.f32 %v2973_v2, %v1545_v37 }
 0x349   : > { %v1630_v39 = vmax.f32 %v1546_v38, 0.0 }
 0x34b   : > { %v1822_v40 = vpop.xlane.xlu0 %1821  ;;  %v1698_v41 = vmul.f32 %v2981_v21, %v1630_v39 }
 0x34c   : > { %v1944_v43 = vadd.f32 %v2799_v62, %v1822_v40 }
 0x34d   : > { %v1862_v44 = vsel %vm583_vm0, %v1698_v41, 0.0 }
 0x34e   : > { %2009 = vst.msk [vmem:[%s2805_s16 + $0x120] sm:$0xff] %vm1972_vm2, %v1944_v43  ;;  %v1547_v45 = vpop.f32.mrf.mxu3  ;;  %1863 = vadd.xlane.f32.xlu2 %v1862_v44 }
 0x34f   : > { %v1548_v46 = vadd.f32 %v2973_v2, %v1547_v45 }
 0x351   : > { %v1631_v47 = vmax.f32 %v1548_v46, 0.0 }
 0x353   : > { %v1825_v48 = vpop.xlane.xlu1 %1824  ;;  %v1699_v49 = vmul.f32 %v2981_v21, %v1631_v47 }
 0x354   : > { %v1945_v50 = vadd.f32 %v2799_v62, %v1825_v48 }
 0x355   : > { %v1865_v52 = vsel %vm583_vm0, %v1699_v49, 0.0 }
 0x356   : > { %2010 = vst.msk [vmem:[%s2805_s16 + $0x128] sm:$0xff] %vm1972_vm2, %v1945_v50  ;;  %v1550_v53 = vpop.f32.mrf.mxu3  ;;  %1866 = vadd.xlane.f32.xlu0 %v1865_v52 }
 0x357   : > { %v1551_v54 = vadd.f32 %v2973_v2, %v1550_v53 }
 0x359   : > { %v1632_v55 = vmax.f32 %v1551_v54, 0.0 }
 0x35b   : > { %v1828_v57 = vpop.xlane.xlu2 %1827  ;;  %v1700_v58 = vmul.f32 %v2981_v21, %v1632_v55 }
 0x35c   : > { %v1946_v59 = vadd.f32 %v3112_v20, %v1828_v57 }
 0x35d   : > { %v1868_v60 = vsel %vm583_vm0, %v1700_v58, 0.0 }
 0x35e   : > { %2011 = vst.msk [vmem:[%s2805_s16 + $0x130] sm:$0xff] %vm1972_vm2, %v1946_v59  ;;  %v1552_v62 = vpop.f32.mrf.mxu3  ;;  %1869 = vadd.xlane.f32.xlu1 %v1868_v60 }
 0x35f   : > { %v1553_v63 = vadd.f32 %v2973_v2, %v1552_v62 }
 0x361   : > { %v1633_v0 = vmax.f32 %v1553_v63, 0.0 }
 0x363   : > { %v1831_v1 = vpop.xlane.xlu0 %1830  ;;  %v1701_v51 = vmul.f32 %v2981_v21, %v1633_v0 }
 0x364   : > { %v1947_v9 = vadd.f32 %v3112_v20, %v1831_v1 }
 0x365   : > { %v1871_v3 = vsel %vm583_vm0, %v1701_v51, 0.0 }
 0x366   : > { %2012 = vst.msk [vmem:[%s2805_s16 + $0x138] sm:$0xff] %vm1972_vm2, %v1947_v9  ;;  %v1555_v56 = vpop.f32.mrf.mxu3  ;;  %1872 = vadd.xlane.f32.xlu2 %v1871_v3 }
 0x367   : > { %v1556_v61 = vadd.f32 %v2973_v2, %v1555_v56 }
 0x369   : > { %v1634_v4 = vmax.f32 %v1556_v61, 0.0 }
 0x36b   : > { %v1834_v5 = vpop.xlane.xlu1 %1833  ;;  %v1702_v6 = vmul.f32 %v2981_v21, %v1634_v4 }
 0x36c   : > { %v1948_v13 = vadd.f32 %v3112_v20, %v1834_v5 }
 0x36d   : > { %v1874_v42 = vsel %vm583_vm0, %v1702_v6, 0.0 }
 0x36e   : > { %2013 = vst.msk [vmem:[%s2805_s16 + $0x140] sm:$0xff] %vm1972_vm2, %v1948_v13  ;;  %v1557_v7 = vpop.f32.mrf.mxu3  ;;  %1875 = vadd.xlane.f32.xlu0 %v1874_v42 }
 0x36f   : > { %v1558_v8 = vadd.f32 %v2973_v2, %v1557_v7 }
 0x371   : > { %v1635_v16 = vmax.f32 %v1558_v8, 0.0 }
 0x373   : > { %v1837_v10 = vpop.xlane.xlu2 %1836  ;;  %v1703_v11 = vmul.f32 %v2981_v21, %v1635_v16 }
 0x374   : > { %v1949_v12 = vadd.f32 %v3112_v20, %v1837_v10 }
 0x375   : > { %v1877_v17 = vsel %vm583_vm0, %v1703_v11, 0.0 }
 0x376   : > { %2014 = vst.msk [vmem:[%s2805_s16 + $0x148] sm:$0xff] %vm1972_vm2, %v1949_v12  ;;  %v1560_v14 = vpop.f32.mrf.mxu3  ;;  %1878 = vadd.xlane.f32.xlu1 %v1877_v17 }
 0x377   : > { %v1561_v15 = vadd.f32 %v2973_v2, %v1560_v14 }
 0x379   : > { %v1636_v18 = vmax.f32 %v1561_v15, 0.0 }
 0x37b   : > { %v1840_v19 = vpop.xlane.xlu0 %1839  ;;  %v1704_v22 = vmul.f32 %v2981_v21, %v1636_v18 }
 0x37c   : > { %v1950_v23 = vadd.f32 %v3112_v20, %v1840_v19 }
 0x37d   : > { %v1880_v24 = vsel %vm583_vm0, %v1704_v22, 0.0 }
 0x37e   : > { %2015 = vst.msk [vmem:[%s2805_s16 + $0x150] sm:$0xff] %vm1972_vm2, %v1950_v23  ;;  %v1562_v25 = vpop.f32.mrf.mxu3  ;;  %1881 = vadd.xlane.f32.xlu2 %v1880_v24 }
 0x37f   : > { %v1563_v26 = vadd.f32 %v2973_v2, %v1562_v25 }
 0x381   : > { %v1637_v27 = vmax.f32 %v1563_v26, 0.0 }
 0x383   : > { %v1843_v29 = vpop.xlane.xlu1 %1842  ;;  %v1705_v30 = vmul.f32 %v2981_v21, %v1637_v27 }
 0x384   : > { %v1951_v31 = vadd.f32 %v3112_v20, %v1843_v29 }
 0x385   : > { %v1883_v32 = vsel %vm583_vm0, %v1705_v30, 0.0 }
 0x386   : > { %2016 = vst.msk [vmem:[%s2805_s16 + $0x158] sm:$0xff] %vm1972_vm2, %v1951_v31  ;;  %v1565_v33 = vpop.f32.mrf.mxu3  ;;  %1884 = vadd.xlane.f32.xlu0 %v1883_v32 }
 0x387   : > { %v1566_v34 = vadd.f32 %v2973_v2, %v1565_v33 }
 0x389   : > { %v1638_v35 = vmax.f32 %v1566_v34, 0.0 }
 0x38b   : > { %v1846_v36 = vpop.xlane.xlu2 %1845  ;;  %v1706_v28 = vmul.f32 %v2981_v21, %v1638_v35 }
 0x38c   : > { %v1952_v37 = vadd.f32 %v3112_v20, %v1846_v36 }
 0x38d   : > { %v1886_v38 = vsel %vm583_vm0, %v1706_v28, 0.0 }
 0x38e   : > { %2017 = vst.msk [vmem:[%s2805_s16 + $0x160] sm:$0xff] %vm1972_vm2, %v1952_v37  ;;  %v1567_v39 = vpop.f32.mrf.mxu3  ;;  %1887 = vadd.xlane.f32.xlu1 %v1886_v38 }
 0x38f   : > { %v1568_v40 = vadd.f32 %v2973_v2, %v1567_v39 }
 0x391   : > { %v1639_v41 = vmax.f32 %v1568_v40, 0.0 }
 0x393   : > { %v1849_v43 = vpop.xlane.xlu0 %1848  ;;  %v1707_v44 = vmul.f32 %v2981_v21, %v1639_v41 }
 0x394   : > { %v1953_v45 = vadd.f32 %v3112_v20, %v1849_v43 }
 0x395   : > { %v1889_v46 = vsel %vm583_vm0, %v1707_v44, 0.0 }
 0x396   : > { %2018 = vst.msk [vmem:[%s2805_s16 + $0x168] sm:$0xff] %vm1972_vm2, %v1953_v45  ;;  %v1570_v47 = vpop.f32.mrf.mxu3  ;;  %1890 = vadd.xlane.f32.xlu2 %v1889_v46 }
 0x397   : > { %v1571_v48 = vadd.f32 %v2973_v2, %v1570_v47 }
 0x399   : > { %v1640_v49 = vmax.f32 %v1571_v48, 0.0 }
 0x39b   : > { %v1708_v50 = vmul.f32 %v2981_v21, %v1640_v49 }
 0x39d   : > { %v1892_v52 = vsel %vm583_vm0, %v1708_v50, 0.0 }
 0x39e   : > { %v1572_v53 = vpop.f32.mrf.mxu3  ;;  %1893 = vadd.xlane.f32.xlu0 %v1892_v52 }
 0x39f   : > { %v1573_v54 = vadd.f32 %v2973_v2, %v1572_v53 }
 0x3a1   : > { %v1641_v55 = vmax.f32 %v1573_v54, 0.0  ;;  %v1852_v57 = vpop.xlane.xlu1 %1851 }
 0x3a2   : > { %v1954_v58 = vadd.f32 %v3112_v20, %v1852_v57 }
 0x3a3   : > { %v1709_v59 = vmul.f32 %v2981_v21, %v1641_v55 }
 0x3a4   : > { %2019 = vst.msk [vmem:[%s2805_s16 + $0x170] sm:$0xff] %vm1972_vm2, %v1954_v58 }
 0x3a5   : > { %v1895_v60 = vsel %vm583_vm0, %v1709_v59, 0.0 }
 0x3a6   : > { %v1575_v62 = vpop.f32.mrf.mxu3  ;;  %1896 = vadd.xlane.f32.xlu1 %v1895_v60 }
 0x3a7   : > { %v1576_v63 = vadd.f32 %v2973_v2, %v1575_v62 }
 0x3a9   : > { %v1642_v0 = vmax.f32 %v1576_v63, 0.0  ;;  %v1855_v1 = vpop.xlane.xlu2 %1854 }
 0x3aa   : > { %v1955_v51 = vadd.f32 %v3112_v20, %v1855_v1 }
 0x3ab   : > { %v1710_v9 = vmul.f32 %v2981_v21, %v1642_v0 }
 0x3ac   : > { %2020 = vst.msk [vmem:[%s2805_s16 + $0x178] sm:$0xff] %vm1972_vm2, %v1955_v51 }
 0x3ad   : > { %v1898_v3 = vsel %vm583_vm0, %v1710_v9, 0.0 }
 0x3ae   : > { %v1577_v56 = vpop.f32.mrf.mxu3  ;;  %1899 = vadd.xlane.f32.xlu2 %v1898_v3 }
 0x3af   : > { %v1578_v61 = vadd.f32 %v2973_v2, %v1577_v56 }
 0x3b1   : > { %v1643_v4 = vmax.f32 %v1578_v61, 0.0  ;;  %v1858_v5 = vpop.xlane.xlu0 %1857 }
 0x3b2   : > { %v1956_v6 = vadd.f32 %v3112_v20, %v1858_v5 }
 0x3b3   : > { %v1711_v13 = vmul.f32 %v2981_v21, %v1643_v4 }
 0x3b4   : > { %2021 = vst.msk [vmem:[%s2805_s16 + $0x180] sm:$0xff] %vm1972_vm2, %v1956_v6 }
 0x3b5   : > { %v1901_v42 = vsel %vm583_vm0, %v1711_v13, 0.0 }
 0x3b6   : > { %1902 = vadd.xlane.f32.xlu0 %v1901_v42 }
 0x3b9   : > { %v1861_v7 = vpop.xlane.xlu1 %1860 }
 0x3ba   : > { %v1957_v8 = vadd.f32 %v3112_v20, %v1861_v7 }
 0x3bc   : > { %2022 = vst.msk [vmem:[%s2805_s16 + $0x188] sm:$0xff] %vm1972_vm2, %v1957_v8 }
 0x3c1   : > { %v1864_v2 = vpop.xlane.xlu2 %1863 }
 0x3c2   : > { %v1958_v16 = vadd.f32 %v3112_v20, %v1864_v2 }
 0x3c4   : > { %2023 = vst.msk [vmem:[%s2805_s16 + $0x190] sm:$0xff] %vm1972_vm2, %v1958_v16 }
 0x3c9   : > { %v1867_v10 = vpop.xlane.xlu0 %1866 }
 0x3ca   : > { %v1959_v21 = vadd.f32 %v3112_v20, %v1867_v10 }
 0x3cc   : > { %2024 = vst.msk [vmem:[%s2805_s16 + $0x198] sm:$0xff] %vm1972_vm2, %v1959_v21 }
 0x3d1   : > { %v1870_v11 = vpop.xlane.xlu1 %1869 }
 0x3d2   : > { %v1960_v12 = vadd.f32 %v3112_v20, %v1870_v11 }
 0x3d4   : > { %2025 = vst.msk [vmem:[%s2805_s16 + $0x1a0] sm:$0xff] %vm1972_vm2, %v1960_v12 }
 0x3d9   : > { %v1873_v17 = vpop.xlane.xlu2 %1872 }
 0x3da   : > { %v1961_v14 = vadd.f32 %v3112_v20, %v1873_v17 }
 0x3dc   : > { %2026 = vst.msk [vmem:[%s2805_s16 + $0x1a8] sm:$0xff] %vm1972_vm2, %v1961_v14 }
 0x3e1   : > { %v1876_v15 = vpop.xlane.xlu0 %1875 }
 0x3e2   : > { %v1962_v18 = vadd.f32 %v3112_v20, %v1876_v15 }
 0x3e4   : > { %2027 = vst.msk [vmem:[%s2805_s16 + $0x1b0] sm:$0xff] %vm1972_vm2, %v1962_v18 }
 0x3e9   : > { %v1879_v19 = vpop.xlane.xlu1 %1878 }
 0x3ea   : > { %v1963_v22 = vadd.f32 %v3112_v20, %v1879_v19 }
 0x3ec   : > { %2028 = vst.msk [vmem:[%s2805_s16 + $0x1b8] sm:$0xff] %vm1972_vm2, %v1963_v22 }
 0x3f1   : > { %v1882_v23 = vpop.xlane.xlu2 %1881 }
 0x3f2   : > { %v1964_v24 = vadd.f32 %v3112_v20, %v1882_v23 }
 0x3f4   : > { %2029 = vst.msk [vmem:[%s2805_s16 + $0x1c0] sm:$0xff] %vm1972_vm2, %v1964_v24 }
 0x3f9   : > { %v1885_v25 = vpop.xlane.xlu0 %1884 }
 0x3fa   : > { %v1965_v26 = vadd.f32 %v3112_v20, %v1885_v25 }
 0x3fc   : > { %2030 = vst.msk [vmem:[%s2805_s16 + $0x1c8] sm:$0xff] %vm1972_vm2, %v1965_v26 }
 0x401   : > { %v1888_v27 = vpop.xlane.xlu1 %1887 }
 0x402   : > { %v1966_v29 = vadd.f32 %v3112_v20, %v1888_v27 }
 0x404   : > { %2031 = vst.msk [vmem:[%s2805_s16 + $0x1d0] sm:$0xff] %vm1972_vm2, %v1966_v29 }
 0x409   : > { %v1891_v30 = vpop.xlane.xlu2 %1890 }
 0x40a   : > { %v1967_v31 = vadd.f32 %v3112_v20, %v1891_v30 }
 0x40c   : > { %2032 = vst.msk [vmem:[%s2805_s16 + $0x1d8] sm:$0xff] %vm1972_vm2, %v1967_v31 }
 0x411   : > { %v1894_v32 = vpop.xlane.xlu0 %1893 }
 0x412   : > { %v1968_v33 = vadd.f32 %v3112_v20, %v1894_v32 }
 0x414   : > { %2033 = vst.msk [vmem:[%s2805_s16 + $0x1e0] sm:$0xff] %vm1972_vm2, %v1968_v33 }
 0x419   : > { %v1897_v34 = vpop.xlane.xlu1 %1896 }
 0x41a   : > { %v1969_v35 = vadd.f32 %v3112_v20, %v1897_v34 }
 0x41c   : > { %2034 = vst.msk [vmem:[%s2805_s16 + $0x1e8] sm:$0xff] %vm1972_vm2, %v1969_v35 }
 0x421   : > { %v1900_v36 = vpop.xlane.xlu2 %1899 }
 0x422   : > { %v1970_v28 = vadd.f32 %v3112_v20, %v1900_v36 }
 0x424   : > { %2035 = vst.msk [vmem:[%s2805_s16 + $0x1f0] sm:$0xff] %vm1972_vm2, %v1970_v28 }
 0x429   : > { %v1903_v37 = vpop.xlane.xlu0 %1902 }
 0x42a   : > { %v1971_v38 = vadd.f32 %v3112_v20, %v1903_v37 }
 0x42c   : > { %2036 = vst.msk [vmem:[%s2805_s16 + $0x1f8] sm:$0xff] %vm1972_vm2, %v1971_v38 }
 0x42d PF: > { %s21_s11 = sadd.s32 1, %s2436_s11  }
 0x42e   : > { %p18_p4 = scmp.ge.s32.totalorder %s21_s11, 4  }
 0x430   :  { %20 = sbr.rel (!%p18_p4) target bundleno = 3 (0x3), region = 86 }

</bundles_post_ra>
